<compile_context>
chip_gen: v6e
topology: v6e:2x2x1
jax: 0.10.0
libtpu: 0.0.40
codegen_flags: <defaults>
</compile_context>

<pallas_src>
import jax
import jax.numpy as jnp
from jax.experimental import pallas as pl
from jax.experimental.pallas import tpu as pltpu

# ---------------------------------------------------------------------------
# Small synthetic CLIP-ViT configuration (shapes consistent with the module).
# ---------------------------------------------------------------------------
BATCH = 2
CHANNELS = 3
IMAGE_SIZE = 16
PATCH_SIZE = 8
HIDDEN = 32
NUM_HEADS = 4
HEAD_DIM = HIDDEN // NUM_HEADS
MLP_DIM = 64
NUM_LAYERS = 3
SELECT_LAYER = -2          # args.mm_vision_select_layer
SELECT_FEATURE = "patch"   # args.mm_vision_select_feature
LN_EPS = 1e-5

NUM_PATCHES = (IMAGE_SIZE // PATCH_SIZE) ** 2   # CLIPVisionTower.num_patches
SEQ = NUM_PATCHES + 1                           # CLS token + patches
PATCH_DIM = CHANNELS * PATCH_SIZE * PATCH_SIZE  # 192


def _round_up(x, m):
    return ((x + m - 1) // m) * m


# Lane/sublane padded sizes (TPU vreg = 8 sublanes x 128 lanes).
D_PAD = _round_up(HIDDEN, 128)        # 128 (activation lane width)
M_PAD = _round_up(MLP_DIM, 128)       # 128
S_PAD = _round_up(SEQ, 8)             # 8 token rows per image


# ---------------------------------------------------------------------------
# Shared math helpers (host-side reference).
# ---------------------------------------------------------------------------
def _quick_gelu(x):
    # HF CLIP uses "quick_gelu": x * sigmoid(1.702 * x)
    return x * jax.nn.sigmoid(1.702 * x)


def _layer_norm(x, g, b, eps=LN_EPS):
    mu = jnp.mean(x, axis=-1, keepdims=True)
    var = jnp.mean((x - mu) ** 2, axis=-1, keepdims=True)
    return (x - mu) * jax.lax.rsqrt(var + eps) * g + b


# ---------------------------------------------------------------------------
# Fused kernel: ONE invocation does patch-embed + pre_layrnorm + all encoder
# layers for all images (batch folded into the sublane/token dimension).
# Padded lanes (>= HIDDEN) stay zero; padded / cross-image token rows are
# neutralised by the additive attention bias and the final host-side slice.
# ---------------------------------------------------------------------------
def _make_fused_kernel(batch, layers_to_run):
    bs = batch * S_PAD      # total token rows

    def kernel(patches_ref, wpatch_ref, base_ref, preln_ref, bias_ref,
               vecs_ref, wqkv_ref, wo_ref, w1_ref, w2_ref, out_ref):
        lane = jax.lax.broadcasted_iota(jnp.int32, (1, D_PAD), 1)
        lane_mask = (lane < HIDDEN).astype(jnp.float32)
        inv_d = jnp.float32(1.0 / HIDDEN)

        def masked_ln(x, g, b):
            # mean AND variance computed over the real HIDDEN lanes only.
            xm = x * lane_mask
            mu = jnp.sum(xm, axis=-1, keepdims=True) * inv_d
            d = (xm - mu) * lane_mask
            var = jnp.sum(d * d, axis=-1, keepdims=True) * inv_d
            return d * jax.lax.rsqrt(var + LN_EPS) * g + b

        bias_all = bias_ref[...]                     # [NUM_HEADS*bs, bs] f32

        # -------- patch embed + CLS/pos + pre_layrnorm (all images) --------
        emb = jnp.dot(patches_ref[...], wpatch_ref[...],
                      preferred_element_type=jnp.float32)        # [bs, D_PAD]
        tokens = emb + jnp.concatenate([base_ref[...]] * batch, axis=0)
        x = masked_ln(tokens, preln_ref[0:1, :], preln_ref[1:2, :])

        nt = (((1,), (1,)), ((), ()))                # q @ k^T (no transpose)

        for li in range(layers_to_run):              # static unroll
            vecs = vecs_ref[li]                      # [8, D_PAD] f32

            # ------------------------------ attention -----------------------
            h = masked_ln(x, vecs[0:1, :], vecs[1:2, :]).astype(jnp.bfloat16)
            # fused QKV projection, contraction K = HIDDEN (no zero rows);
            # Wq / bq are pre-scaled by head_dim**-0.5 at pack time.
            qkv = jnp.dot(h[:, :HIDDEN], wqkv_ref[li],
                          preferred_element_type=jnp.float32) + vecs[2:3, :]
            q = qkv[:, 0 * HIDDEN:1 * HIDDEN].astype(jnp.bfloat16)
            k = qkv[:, 1 * HIDDEN:2 * HIDDEN].astype(jnp.bfloat16)
            v = qkv[:, 2 * HIDDEN:3 * HIDDEN].astype(jnp.bfloat16)

            # per-head score tiles stacked along sublanes -> softmax runs once
            scs = [jax.lax.dot_general(q[:, hd * HEAD_DIM:(hd + 1) * HEAD_DIM],
                                       k[:, hd * HEAD_DIM:(hd + 1) * HEAD_DIM],
                                       nt, preferred_element_type=jnp.float32)
                   for hd in range(NUM_HEADS)]
            sc = jnp.concatenate(scs, axis=0) + bias_all     # [NH*bs, bs]
            sc = sc - jnp.max(sc, axis=-1, keepdims=True)
            e = jnp.exp(sc)
            p = (e * pl.reciprocal(jnp.sum(e, axis=-1, keepdims=True),
                                   approx=True)).astype(jnp.bfloat16)

            wo = wo_ref[li]                                   # [HIDDEN, D_PAD]
            attn_out = jnp.zeros((bs, D_PAD), jnp.float32)
            for hd in range(NUM_HEADS):
                ctx = jnp.dot(p[hd * bs:(hd + 1) * bs, :],
                              v[:, hd * HEAD_DIM:(hd + 1) * HEAD_DIM],
                              preferred_element_type=jnp.float32)
                attn_out = attn_out + jnp.dot(
                    ctx.astype(jnp.bfloat16),
                    wo[hd * HEAD_DIM:(hd + 1) * HEAD_DIM, :],
                    preferred_element_type=jnp.float32)
            x = x + attn_out + vecs[3:4, :]

            # -------------------------------- MLP ---------------------------
            h2 = masked_ln(x, vecs[4:5, :], vecs[5:6, :]).astype(jnp.bfloat16)
            f1 = jnp.dot(h2[:, :HIDDEN], w1_ref[li],
                         preferred_element_type=jnp.float32) + vecs[6:7, :]
            f1 = f1 * jax.nn.sigmoid(1.702 * f1)              # quick_gelu
            f2 = jnp.dot(f1[:, :MLP_DIM].astype(jnp.bfloat16), w2_ref[li],
                         preferred_element_type=jnp.float32) + vecs[7:8, :]
            x = x + f2

        out_ref[...] = x.astype(out_ref.dtype)        # single lane-dense store

    return kernel


# ---------------------------------------------------------------------------
# Host-side packing: run ONCE at model-load time (outside the jitted forward).
# Weights are packed lane-dense with their TRUE contraction sizes, bf16-cast.
# ---------------------------------------------------------------------------
def pack_params(params, layers_to_run):
    f32, bf16 = jnp.float32, jnp.bfloat16
    scale = HEAD_DIM ** -0.5

    w_patch = jnp.zeros((PATCH_DIM, D_PAD), f32)
    w_patch = w_patch.at[:, :HIDDEN].set(params["w_patch"]).astype(bf16)

    # CLS token + positional embeddings folded into one additive base.
    base = jnp.zeros((S_PAD, D_PAD), f32)
    base = base.at[0, :HIDDEN].set(params["cls"][0] + params["pos"][0])
    base = base.at[1:SEQ, :HIDDEN].set(params["pos"][1:])

    pre_ln = jnp.zeros((8, D_PAD), f32)
    pre_ln = pre_ln.at[0, :HIDDEN].set(params["pre_ln_g"][0])
    pre_ln = pre_ln.at[1, :HIDDEN].set(params["pre_ln_b"][0])

    vecs, wqkv, wo, w1, w2 = [], [], [], [], []
    for li in range(layers_to_run):
        lp = params["layers"][li]

        v = jnp.zeros((8, D_PAD), f32)
        v = v.at[0, :HIDDEN].set(lp["ln1_g"][0])
        v = v.at[1, :HIDDEN].set(lp["ln1_b"][0])
        v = v.at[2, 0 * HIDDEN:1 * HIDDEN].set(lp["bq"][0] * scale)
        v = v.at[2, 1 * HIDDEN:2 * HIDDEN].set(lp["bk"][0])
        v = v.at[2, 2 * HIDDEN:3 * HIDDEN].set(lp["bv"][0])
        v = v.at[3, :HIDDEN].set(lp["bo"][0])
        v = v.at[4, :HIDDEN].set(lp["ln2_g"][0])
        v = v.at[5, :HIDDEN].set(lp["ln2_b"][0])
        v = v.at[6, :MLP_DIM].set(lp["b1"][0])
        v = v.at[7, :HIDDEN].set(lp["b2"][0])
        vecs.append(v)

        qkv = jnp.zeros((HIDDEN, D_PAD), f32)
        qkv = qkv.at[:, 0 * HIDDEN:1 * HIDDEN].set(lp["wq"] * scale)
        qkv = qkv.at[:, 1 * HIDDEN:2 * HIDDEN].set(lp["wk"])
        qkv = qkv.at[:, 2 * HIDDEN:3 * HIDDEN].set(lp["wv"])
        wqkv.append(qkv.astype(bf16))

        wo.append(jnp.zeros((HIDDEN, D_PAD), f32)
                  .at[:, :HIDDEN].set(lp["wo"]).astype(bf16))
        w1.append(jnp.zeros((HIDDEN, M_PAD), f32)
                  .at[:, :MLP_DIM].set(lp["w1"]).astype(bf16))
        w2.append(jnp.zeros((MLP_DIM, D_PAD), f32)
                  .at[:, :HIDDEN].set(lp["w2"]).astype(bf16))

    return dict(w_patch=w_patch, base=base, pre_ln=pre_ln,
                vecs=jnp.stack(vecs), wqkv=jnp.stack(wqkv), wo=jnp.stack(wo),
                w1=jnp.stack(w1), w2=jnp.stack(w2))


def _im2col(images):
    """NCHW -> [B, P, C*p*p] with (c, ki, kj) flattening (matches conv weight)."""
    B, C, H, W = images.shape
    p = PATCH_SIZE
    x = images.reshape(B, C, H // p, p, W // p, p)
    x = x.transpose(0, 2, 4, 1, 3, 5)                 # [B, gh, gw, C, p, p]
    return x.reshape(B, (H // p) * (W // p), C * p * p)


def _attn_bias(batch):
    """Additive attention bias: per-image block-diagonal + valid-key mask,
    pre-tiled over heads.  Constant-folded by XLA under jit."""
    bs = batch * S_PAD
    img = jnp.arange(bs) // S_PAD
    tok = jnp.arange(bs) % S_PAD
    ok = (img[:, None] == img[None, :]) & (tok < SEQ)[None, :]
    bias = jnp.where(ok, 0.0, -1e30).astype(jnp.float32)       # [bs, bs]
    return jnp.tile(bias, (NUM_HEADS, 1))                      # [NH*bs, bs]


def clip_vision_tower_forward(images, packed, select_feature=SELECT_FEATURE):
    B = images.shape[0]
    layers_to_run = packed["wqkv"].shape[0]
    bs = B * S_PAD

    patches = _im2col(images.astype(jnp.float32))              # [B, P, 192]
    # Row 0 of each image is the (all-zero) CLS slot; pad token rows to S_PAD.
    patches = jnp.pad(patches, ((0, 0), (1, S_PAD - 1 - NUM_PATCHES), (0, 0)))
    patches = patches.reshape(bs, PATCH_DIM).astype(jnp.bfloat16)

    bias_all = _attn_bias(B)
    L = layers_to_run

    hidden_pad = pl.pallas_call(
        _make_fused_kernel(B, layers_to_run),
        out_shape=jax.ShapeDtypeStruct((bs, D_PAD), jnp.bfloat16),
        grid=(1,),
        in_specs=[
            pl.BlockSpec((bs, PATCH_DIM), lambda i: (0, 0)),          # patches
            pl.BlockSpec((PATCH_DIM, D_PAD), lambda i: (0, 0)),       # w_patch
            pl.BlockSpec((S_PAD, D_PAD), lambda i: (0, 0)),           # cls+pos
            pl.BlockSpec((8, D_PAD), lambda i: (0, 0)),               # pre-LN
            pl.BlockSpec((NUM_HEADS * bs, bs), lambda i: (0, 0)),     # attn bias
            pl.BlockSpec((L, 8, D_PAD), lambda i: (0, 0, 0)),         # biases/gains
            pl.BlockSpec((L, HIDDEN, D_PAD), lambda i: (0, 0, 0)),    # fused Wqkv
            pl.BlockSpec((L, HIDDEN, D_PAD), lambda i: (0, 0, 0)),    # Wo
            pl.BlockSpec((L, HIDDEN, M_PAD), lambda i: (0, 0, 0)),    # fc1
            pl.BlockSpec((L, MLP_DIM, D_PAD), lambda i: (0, 0, 0)),   # fc2
        ],
        out_specs=pl.BlockSpec((bs, D_PAD), lambda i: (0, 0)),
        compiler_params=pltpu.CompilerParams(
            dimension_semantics=("arbitrary",)),
    )(patches, packed["w_patch"], packed["base"], packed["pre_ln"], bias_all,
      packed["vecs"], packed["wqkv"], packed["wo"], packed["w1"], packed["w2"])

    hidden = hidden_pad.reshape(B, S_PAD, D_PAD)[:, :SEQ, :HIDDEN]
    hidden = hidden.astype(jnp.float32)

    # feature_select
    if select_feature == "patch":
        feats = hidden[:, 1:]
    elif select_feature == "cls_patch":
        feats = hidden
    else:
        raise ValueError(f"Unexpected select feature: {select_feature}")
    return feats.astype(images.dtype)


# ---------------------------------------------------------------------------
# Pure-JAX reference (independent formulation, reshape-based multi-head).
# ---------------------------------------------------------------------------
def reference_forward(images, params,
                      select_layer=SELECT_LAYER, select_feature=SELECT_FEATURE):
    n_states = NUM_LAYERS + 1
    layers_to_run = select_layer + n_states if select_layer < 0 else select_layer

    patches = _im2col(images.astype(jnp.float32))                    # [B, P, Cpp]
    emb = jnp.einsum("bpc,cd->bpd", patches, params["w_patch"])
    cls = jnp.broadcast_to(params["cls"][None], (emb.shape[0], 1, HIDDEN))
    x = jnp.concatenate([cls, emb], axis=1) + params["pos"][None]
    x = _layer_norm(x, params["pre_ln_g"], params["pre_ln_b"])

    for li in range(layers_to_run):
        lp = params["layers"][li]
        res = x
        h = _layer_norm(x, lp["ln1_g"], lp["ln1_b"])
        q = (h @ lp["wq"] + lp["bq"]) * (HEAD_DIM ** -0.5)
        k = h @ lp["wk"] + lp["bk"]
        v = h @ lp["wv"] + lp["bv"]
        B, S, D = q.shape
        qh = q.reshape(B, S, NUM_HEADS, HEAD_DIM).transpose(0, 2, 1, 3)
        kh = k.reshape(B, S, NUM_HEADS, HEAD_DIM).transpose(0, 2, 1, 3)
        vh = v.reshape(B, S, NUM_HEADS, HEAD_DIM).transpose(0, 2, 1, 3)
        attn = jax.nn.softmax(jnp.einsum("bhqd,bhkd->bhqk", qh, kh), axis=-1)
        ctx = jnp.einsum("bhqk,bhkd->bhqd", attn, vh)
        ctx = ctx.transpose(0, 2, 1, 3).reshape(B, S, D)
        x = res + (ctx @ lp["wo"] + lp["bo"])
        res = x
        h = _layer_norm(x, lp["ln2_g"], lp["ln2_b"])
        h = _quick_gelu(h @ lp["w1"] + lp["b1"]) @ lp["w2"] + lp["b2"]
        x = res + h

    feats = x[:, 1:] if select_feature == "patch" else x
    return feats.astype(images.dtype)


# ---------------------------------------------------------------------------
# Deterministic synthetic parameter init (shapes from CLIPVisionModel config).
# ---------------------------------------------------------------------------
def init_params(key):
    def nrm(k, shape, scale=0.02):
        return (scale * jax.random.normal(k, shape)).astype(jnp.float32)

    keys = jax.random.split(key, 4 + NUM_LAYERS)
    params = {
        "w_patch": nrm(keys[0], (PATCH_DIM, HIDDEN)),        # conv, no bias
        "cls": nrm(keys[1], (1, HIDDEN)),
        "pos": nrm(keys[2], (SEQ, HIDDEN)),
        "pre_ln_g": jnp.ones((1, HIDDEN), jnp.float32),
        "pre_ln_b": jnp.zeros((1, HIDDEN), jnp.float32),
        "layers": [],
    }
    for li in range(NUM_LAYERS):
        lk = jax.random.split(keys[4 + li], 6)
        params["layers"].append({
            "ln1_g": jnp.ones((1, HIDDEN), jnp.float32),
            "ln1_b": jnp.zeros((1, HIDDEN), jnp.float32),
            "wq": nrm(lk[0], (HIDDEN, HIDDEN)), "bq": jnp.zeros((1, HIDDEN), jnp.float32),
            "wk": nrm(lk[1], (HIDDEN, HIDDEN)), "bk": jnp.zeros((1, HIDDEN), jnp.float32),
            "wv": nrm(lk[2], (HIDDEN, HIDDEN)), "bv": jnp.zeros((1, HIDDEN), jnp.float32),
            "wo": nrm(lk[3], (HIDDEN, HIDDEN)), "bo": jnp.zeros((1, HIDDEN), jnp.float32),
            "ln2_g": jnp.ones((1, HIDDEN), jnp.float32),
            "ln2_b": jnp.zeros((1, HIDDEN), jnp.float32),
            "w1": nrm(lk[4], (HIDDEN, MLP_DIM)), "b1": jnp.zeros((1, MLP_DIM), jnp.float32),
            "w2": nrm(lk[5], (MLP_DIM, HIDDEN)), "b2": jnp.zeros((1, HIDDEN), jnp.float32),
        })
    return params


# TODO(synk): the `type(images) is list` branch and CLIPImageProcessor /
# checkpoint loading in load_model() are host-side I/O, not kernel work.

if __name__ == "__main__":
    key = jax.random.PRNGKey(0)
    pkey, ikey = jax.random.split(key)
    params = init_params(pkey)
    images = jax.random.normal(ikey, (BATCH, CHANNELS, IMAGE_SIZE, IMAGE_SIZE),
                               dtype=jnp.float32)

    # hidden_states has NUM_LAYERS+1 entries; select_layer=-2 => run L-1 layers.
    n_states = NUM_LAYERS + 1
    layers_to_run = SELECT_LAYER + n_states if SELECT_LAYER < 0 else SELECT_LAYER
    assert 1 <= layers_to_run <= NUM_LAYERS

    # Pack parameters ONCE (model-load time), outside the jitted forward.
    packed = pack_params(params, layers_to_run)

    fwd = jax.jit(clip_vision_tower_forward)
    out = jax.block_until_ready(fwd(images, packed))

    assert out.shape == (BATCH, NUM_PATCHES, HIDDEN), out.shape
    ref = jax.block_until_ready(reference_forward(images, params))
    assert jnp.allclose(out, ref, rtol=2e-2, atol=2e-2), \
        float(jnp.max(jnp.abs(out - ref)))

    print("KERNEL_OK")
</pallas_src>

<mosaic_0001>
module attributes {stable_mosaic.version = 11 : i64} {
  func.func @kernel(%arg0: i32, %arg1: memref<16x192xbf16, #tpu.memory_space<vmem>>, %arg2: memref<192x128xbf16, #tpu.memory_space<vmem>>, %arg3: memref<8x128xf32, #tpu.memory_space<vmem>>, %arg4: memref<8x128xf32, #tpu.memory_space<vmem>>, %arg5: memref<64x16xf32, #tpu.memory_space<vmem>>, %arg6: memref<2x8x128xf32, #tpu.memory_space<vmem>>, %arg7: memref<2x32x128xbf16, #tpu.memory_space<vmem>>, %arg8: memref<2x32x128xbf16, #tpu.memory_space<vmem>>, %arg9: memref<2x32x128xbf16, #tpu.memory_space<vmem>>, %arg10: memref<2x64x128xbf16, #tpu.memory_space<vmem>>, %arg11: memref<16x128xbf16, #tpu.memory_space<vmem>>) attributes {dimension_semantics = [#tpu.dimension_semantics<arbitrary>], iteration_bounds = array<i64: 1>, scalar_prefetch = 0 : i64, scratch_operands = 0 : i64, tpu.core_type = #tpu.core_type<tc>, window_params = [{pipeline_mode = #tpu.pipeline_mode<synchronous>, transform_indices = @transform_0, window_bounds = array<i64: 16, 192>}, {pipeline_mode = #tpu.pipeline_mode<synchronous>, transform_indices = @transform_1, window_bounds = array<i64: 192, 128>}, {pipeline_mode = #tpu.pipeline_mode<synchronous>, transform_indices = @transform_2, window_bounds = array<i64: 8, 128>}, {pipeline_mode = #tpu.pipeline_mode<synchronous>, transform_indices = @transform_3, window_bounds = array<i64: 8, 128>}, {pipeline_mode = #tpu.pipeline_mode<synchronous>, transform_indices = @transform_4, window_bounds = array<i64: 64, 16>}, {pipeline_mode = #tpu.pipeline_mode<synchronous>, transform_indices = @transform_5, window_bounds = array<i64: 2, 8, 128>}, {pipeline_mode = #tpu.pipeline_mode<synchronous>, transform_indices = @transform_6, window_bounds = array<i64: 2, 32, 128>}, {pipeline_mode = #tpu.pipeline_mode<synchronous>, transform_indices = @transform_7, window_bounds = array<i64: 2, 32, 128>}, {pipeline_mode = #tpu.pipeline_mode<synchronous>, transform_indices = @transform_8, window_bounds = array<i64: 2, 32, 128>}, {pipeline_mode = #tpu.pipeline_mode<synchronous>, transform_indices = @transform_9, window_bounds = array<i64: 2, 64, 128>}, {pipeline_mode = #tpu.pipeline_mode<synchronous>, transform_indices = @transform_10, window_bounds = array<i64: 16, 128>}]} {
    %0 = tpu.iota {dimensions = array<i32: 1>} : vector<1x128xi32>
    %c32_i32 = arith.constant 32 : i32
    %1 = vector.broadcast %c32_i32 : i32 to vector<1x128xi32>
    %2 = arith.cmpi slt, %0, %1 : vector<1x128xi32>
    %3 = arith.extui %2 : vector<1x128xi1> to vector<1x128xi32>
    %4 = arith.sitofp %3 : vector<1x128xi32> to vector<1x128xf32>
    %c0 = arith.constant 0 : index
    %c0_0 = arith.constant 0 : index
    %5 = vector.load %arg5[%c0, %c0_0] : memref<64x16xf32, #tpu.memory_space<vmem>>, vector<64x16xf32>
    %c0_1 = arith.constant 0 : index
    %c0_2 = arith.constant 0 : index
    %6 = vector.load %arg1[%c0_1, %c0_2] : memref<16x192xbf16, #tpu.memory_space<vmem>>, vector<16x192xbf16>
    %c0_3 = arith.constant 0 : index
    %c0_4 = arith.constant 0 : index
    %7 = vector.load %arg2[%c0_3, %c0_4] : memref<192x128xbf16, #tpu.memory_space<vmem>>, vector<192x128xbf16>
    %cst = arith.constant dense<0.000000e+00> : vector<16x128xf32>
    %8 = tpu.matmul %6, %7, %cst {dimension_numbers = #tpu.dot_dimension_numbers<[1], [0], [0], [1], [0, 0, 1, 1], [], []>} : vector<16x192xbf16>, vector<192x128xbf16>, vector<16x128xf32> -> vector<16x128xf32>
    %c0_5 = arith.constant 0 : index
    %c0_6 = arith.constant 0 : index
    %9 = vector.load %arg3[%c0_5, %c0_6] : memref<8x128xf32, #tpu.memory_space<vmem>>, vector<8x128xf32>
    %10 = tpu.concatenate %9, %9 in 0 : vector<8x128xf32>, vector<8x128xf32> -> vector<16x128xf32>
    %11 = arith.addf %8, %10 : vector<16x128xf32>
    %c0_7 = arith.constant 0 : index
    %c0_8 = arith.constant 0 : index
    %12 = vector.load %arg4[%c0_7, %c0_8] : memref<8x128xf32, #tpu.memory_space<vmem>>, vector<1x128xf32>
    %c1 = arith.constant 1 : index
    %c0_9 = arith.constant 0 : index
    %13 = vector.load %arg4[%c1, %c0_9] : memref<8x128xf32, #tpu.memory_space<vmem>>, vector<1x128xf32>
    %14 = vector.broadcast %4 : vector<1x128xf32> to vector<16x128xf32>
    %15 = arith.mulf %11, %14 : vector<16x128xf32>
    %cst_10 = arith.constant dense<0.000000e+00> : vector<16xf32>
    %16 = vector.multi_reduction <add>, %15, %cst_10 [1] : vector<16x128xf32> to vector<16xf32>
    %17 = vector.shape_cast %16 : vector<16xf32> to vector<16x1xf32>
    %cst_11 = arith.constant 3.125000e-02 : f32
    %18 = vector.broadcast %cst_11 : f32 to vector<16x1xf32>
    %19 = arith.mulf %17, %18 : vector<16x1xf32>
    %20 = vector.broadcast %19 : vector<16x1xf32> to vector<16x128xf32>
    %21 = arith.subf %15, %20 : vector<16x128xf32>
    %22 = vector.broadcast %4 : vector<1x128xf32> to vector<16x128xf32>
    %23 = arith.mulf %21, %22 : vector<16x128xf32>
    %24 = arith.mulf %23, %23 : vector<16x128xf32>
    %cst_12 = arith.constant dense<0.000000e+00> : vector<16xf32>
    %25 = vector.multi_reduction <add>, %24, %cst_12 [1] : vector<16x128xf32> to vector<16xf32>
    %26 = vector.shape_cast %25 : vector<16xf32> to vector<16x1xf32>
    %cst_13 = arith.constant 3.125000e-02 : f32
    %27 = vector.broadcast %cst_13 : f32 to vector<16x1xf32>
    %28 = arith.mulf %26, %27 : vector<16x1xf32>
    %cst_14 = arith.constant 9.99999974E-6 : f32
    %29 = vector.broadcast %cst_14 : f32 to vector<16x1xf32>
    %30 = arith.addf %28, %29 : vector<16x1xf32>
    %31 = math.rsqrt %30 : vector<16x1xf32>
    %32 = vector.broadcast %31 : vector<16x1xf32> to vector<16x128xf32>
    %33 = arith.mulf %23, %32 : vector<16x128xf32>
    %34 = vector.broadcast %12 : vector<1x128xf32> to vector<16x128xf32>
    %35 = arith.mulf %33, %34 : vector<16x128xf32>
    %36 = vector.broadcast %13 : vector<1x128xf32> to vector<16x128xf32>
    %37 = arith.addf %35, %36 : vector<16x128xf32>
    %c0_15 = arith.constant 0 : index
    %c0_16 = arith.constant 0 : index
    %c0_17 = arith.constant 0 : index
    %38 = vector.load %arg6[%c0_15, %c0_16, %c0_17] : memref<2x8x128xf32, #tpu.memory_space<vmem>>, vector<1x8x128xf32>
    %39 = vector.shape_cast %38 : vector<1x8x128xf32> to vector<8x128xf32>
    %40 = vector.extract_strided_slice %39 {offsets = [0, 0], sizes = [1, 128], strides = [1, 1]} : vector<8x128xf32> to vector<1x128xf32>
    %41 = vector.extract_strided_slice %39 {offsets = [1, 0], sizes = [1, 128], strides = [1, 1]} : vector<8x128xf32> to vector<1x128xf32>
    %42 = vector.broadcast %4 : vector<1x128xf32> to vector<16x128xf32>
    %43 = arith.mulf %37, %42 : vector<16x128xf32>
    %cst_18 = arith.constant dense<0.000000e+00> : vector<16xf32>
    %44 = vector.multi_reduction <add>, %43, %cst_18 [1] : vector<16x128xf32> to vector<16xf32>
    %45 = vector.shape_cast %44 : vector<16xf32> to vector<16x1xf32>
    %cst_19 = arith.constant 3.125000e-02 : f32
    %46 = vector.broadcast %cst_19 : f32 to vector<16x1xf32>
    %47 = arith.mulf %45, %46 : vector<16x1xf32>
    %48 = vector.broadcast %47 : vector<16x1xf32> to vector<16x128xf32>
    %49 = arith.subf %43, %48 : vector<16x128xf32>
    %50 = vector.broadcast %4 : vector<1x128xf32> to vector<16x128xf32>
    %51 = arith.mulf %49, %50 : vector<16x128xf32>
    %52 = arith.mulf %51, %51 : vector<16x128xf32>
    %cst_20 = arith.constant dense<0.000000e+00> : vector<16xf32>
    %53 = vector.multi_reduction <add>, %52, %cst_20 [1] : vector<16x128xf32> to vector<16xf32>
    %54 = vector.shape_cast %53 : vector<16xf32> to vector<16x1xf32>
    %cst_21 = arith.constant 3.125000e-02 : f32
    %55 = vector.broadcast %cst_21 : f32 to vector<16x1xf32>
    %56 = arith.mulf %54, %55 : vector<16x1xf32>
    %cst_22 = arith.constant 9.99999974E-6 : f32
    %57 = vector.broadcast %cst_22 : f32 to vector<16x1xf32>
    %58 = arith.addf %56, %57 : vector<16x1xf32>
    %59 = math.rsqrt %58 : vector<16x1xf32>
    %60 = vector.broadcast %59 : vector<16x1xf32> to vector<16x128xf32>
    %61 = arith.mulf %51, %60 : vector<16x128xf32>
    %62 = vector.broadcast %40 : vector<1x128xf32> to vector<16x128xf32>
    %63 = arith.mulf %61, %62 : vector<16x128xf32>
    %64 = vector.broadcast %41 : vector<1x128xf32> to vector<16x128xf32>
    %65 = arith.addf %63, %64 : vector<16x128xf32>
    %66 = arith.truncf %65 : vector<16x128xf32> to vector<16x128xbf16>
    %67 = vector.extract_strided_slice %66 {offsets = [0, 0], sizes = [16, 32], strides = [1, 1]} : vector<16x128xbf16> to vector<16x32xbf16>
    %c0_23 = arith.constant 0 : index
    %c0_24 = arith.constant 0 : index
    %c0_25 = arith.constant 0 : index
    %68 = vector.load %arg7[%c0_23, %c0_24, %c0_25] : memref<2x32x128xbf16, #tpu.memory_space<vmem>>, vector<1x32x128xbf16>
    %69 = vector.shape_cast %68 : vector<1x32x128xbf16> to vector<32x128xbf16>
    %cst_26 = arith.constant dense<0.000000e+00> : vector<16x128xf32>
    %70 = tpu.matmul %67, %69, %cst_26 {dimension_numbers = #tpu.dot_dimension_numbers<[1], [0], [0], [1], [0, 0, 1, 1], [], []>} : vector<16x32xbf16>, vector<32x128xbf16>, vector<16x128xf32> -> vector<16x128xf32>
    %71 = vector.extract_strided_slice %39 {offsets = [2, 0], sizes = [1, 128], strides = [1, 1]} : vector<8x128xf32> to vector<1x128xf32>
    %72 = vector.broadcast %71 : vector<1x128xf32> to vector<16x128xf32>
    %73 = arith.addf %70, %72 : vector<16x128xf32>
    %74 = vector.extract_strided_slice %73 {offsets = [0, 0], sizes = [16, 32], strides = [1, 1]} : vector<16x128xf32> to vector<16x32xf32>
    %75 = arith.truncf %74 : vector<16x32xf32> to vector<16x32xbf16>
    %76 = vector.extract_strided_slice %73 {offsets = [0, 32], sizes = [16, 32], strides = [1, 1]} : vector<16x128xf32> to vector<16x32xf32>
    %77 = arith.truncf %76 : vector<16x32xf32> to vector<16x32xbf16>
    %78 = vector.extract_strided_slice %73 {offsets = [0, 64], sizes = [16, 32], strides = [1, 1]} : vector<16x128xf32> to vector<16x32xf32>
    %79 = arith.truncf %78 : vector<16x32xf32> to vector<16x32xbf16>
    %80 = vector.extract_strided_slice %75 {offsets = [0, 0], sizes = [16, 8], strides = [1, 1]} : vector<16x32xbf16> to vector<16x8xbf16>
    %81 = vector.extract_strided_slice %77 {offsets = [0, 0], sizes = [16, 8], strides = [1, 1]} : vector<16x32xbf16> to vector<16x8xbf16>
    %cst_27 = arith.constant dense<0.000000e+00> : vector<16x16xf32>
    %82 = tpu.matmul %80, %81, %cst_27 {dimension_numbers = #tpu.dot_dimension_numbers<[1], [1], [0], [0], [0, 0, 1, 0], [], []>} : vector<16x8xbf16>, vector<16x8xbf16>, vector<16x16xf32> -> vector<16x16xf32>
    %83 = vector.extract_strided_slice %75 {offsets = [0, 8], sizes = [16, 8], strides = [1, 1]} : vector<16x32xbf16> to vector<16x8xbf16>
    %84 = vector.extract_strided_slice %77 {offsets = [0, 8], sizes = [16, 8], strides = [1, 1]} : vector<16x32xbf16> to vector<16x8xbf16>
    %cst_28 = arith.constant dense<0.000000e+00> : vector<16x16xf32>
    %85 = tpu.matmul %83, %84, %cst_28 {dimension_numbers = #tpu.dot_dimension_numbers<[1], [1], [0], [0], [0, 0, 1, 0], [], []>} : vector<16x8xbf16>, vector<16x8xbf16>, vector<16x16xf32> -> vector<16x16xf32>
    %86 = vector.extract_strided_slice %75 {offsets = [0, 16], sizes = [16, 8], strides = [1, 1]} : vector<16x32xbf16> to vector<16x8xbf16>
    %87 = vector.extract_strided_slice %77 {offsets = [0, 16], sizes = [16, 8], strides = [1, 1]} : vector<16x32xbf16> to vector<16x8xbf16>
    %cst_29 = arith.constant dense<0.000000e+00> : vector<16x16xf32>
    %88 = tpu.matmul %86, %87, %cst_29 {dimension_numbers = #tpu.dot_dimension_numbers<[1], [1], [0], [0], [0, 0, 1, 0], [], []>} : vector<16x8xbf16>, vector<16x8xbf16>, vector<16x16xf32> -> vector<16x16xf32>
    %89 = vector.extract_strided_slice %75 {offsets = [0, 24], sizes = [16, 8], strides = [1, 1]} : vector<16x32xbf16> to vector<16x8xbf16>
    %90 = vector.extract_strided_slice %77 {offsets = [0, 24], sizes = [16, 8], strides = [1, 1]} : vector<16x32xbf16> to vector<16x8xbf16>
    %cst_30 = arith.constant dense<0.000000e+00> : vector<16x16xf32>
    %91 = tpu.matmul %89, %90, %cst_30 {dimension_numbers = #tpu.dot_dimension_numbers<[1], [1], [0], [0], [0, 0, 1, 0], [], []>} : vector<16x8xbf16>, vector<16x8xbf16>, vector<16x16xf32> -> vector<16x16xf32>
    %92 = tpu.concatenate %82, %85, %88, %91 in 0 : vector<16x16xf32>, vector<16x16xf32>, vector<16x16xf32>, vector<16x16xf32> -> vector<64x16xf32>
    %93 = arith.addf %92, %5 : vector<64x16xf32>
    %cst_31 = arith.constant dense<0xFF800000> : vector<64xf32>
    %94 = vector.multi_reduction <maximumf>, %93, %cst_31 [1] : vector<64x16xf32> to vector<64xf32>
    %95 = vector.shape_cast %94 : vector<64xf32> to vector<64x1xf32>
    %96 = vector.broadcast %95 : vector<64x1xf32> to vector<64x16xf32>
    %97 = arith.subf %93, %96 : vector<64x16xf32>
    %98 = math.exp %97 : vector<64x16xf32>
    %cst_32 = arith.constant dense<0.000000e+00> : vector<64xf32>
    %99 = vector.multi_reduction <add>, %98, %cst_32 [1] : vector<64x16xf32> to vector<64xf32>
    %100 = vector.shape_cast %99 : vector<64xf32> to vector<64x1xf32>
    %101 = tpu.reciprocal %100 {approx = true} : vector<64x1xf32> -> vector<64x1xf32>
    %102 = vector.broadcast %101 : vector<64x1xf32> to vector<64x16xf32>
    %103 = arith.mulf %98, %102 : vector<64x16xf32>
    %104 = arith.truncf %103 : vector<64x16xf32> to vector<64x16xbf16>
    %c0_33 = arith.constant 0 : index
    %c0_34 = arith.constant 0 : index
    %c0_35 = arith.constant 0 : index
    %105 = vector.load %arg8[%c0_33, %c0_34, %c0_35] : memref<2x32x128xbf16, #tpu.memory_space<vmem>>, vector<1x32x128xbf16>
    %106 = vector.shape_cast %105 : vector<1x32x128xbf16> to vector<32x128xbf16>
    %cst_36 = arith.constant 0.000000e+00 : f32
    %107 = vector.broadcast %cst_36 : f32 to vector<16x128xf32>
    %108 = vector.extract_strided_slice %104 {offsets = [0, 0], sizes = [16, 16], strides = [1, 1]} : vector<64x16xbf16> to vector<16x16xbf16>
    %109 = vector.extract_strided_slice %79 {offsets = [0, 0], sizes = [16, 8], strides = [1, 1]} : vector<16x32xbf16> to vector<16x8xbf16>
    %cst_37 = arith.constant dense<0.000000e+00> : vector<16x8xf32>
    %110 = tpu.matmul %108, %109, %cst_37 {dimension_numbers = #tpu.dot_dimension_numbers<[1], [0], [0], [1], [0, 0, 1, 1], [], []>} : vector<16x16xbf16>, vector<16x8xbf16>, vector<16x8xf32> -> vector<16x8xf32>
    %111 = arith.truncf %110 : vector<16x8xf32> to vector<16x8xbf16>
    %112 = vector.extract_strided_slice %106 {offsets = [0, 0], sizes = [8, 128], strides = [1, 1]} : vector<32x128xbf16> to vector<8x128xbf16>
    %cst_38 = arith.constant dense<0.000000e+00> : vector<16x128xf32>
    %113 = tpu.matmul %111, %112, %cst_38 {dimension_numbers = #tpu.dot_dimension_numbers<[1], [0], [0], [1], [0, 0, 1, 1], [], []>} : vector<16x8xbf16>, vector<8x128xbf16>, vector<16x128xf32> -> vector<16x128xf32>
    %114 = arith.addf %107, %113 : vector<16x128xf32>
    %115 = vector.extract_strided_slice %104 {offsets = [16, 0], sizes = [16, 16], strides = [1, 1]} : vector<64x16xbf16> to vector<16x16xbf16>
    %116 = vector.extract_strided_slice %79 {offsets = [0, 8], sizes = [16, 8], strides = [1, 1]} : vector<16x32xbf16> to vector<16x8xbf16>
    %cst_39 = arith.constant dense<0.000000e+00> : vector<16x8xf32>
    %117 = tpu.matmul %115, %116, %cst_39 {dimension_numbers = #tpu.dot_dimension_numbers<[1], [0], [0], [1], [0, 0, 1, 1], [], []>} : vector<16x16xbf16>, vector<16x8xbf16>, vector<16x8xf32> -> vector<16x8xf32>
    %118 = arith.truncf %117 : vector<16x8xf32> to vector<16x8xbf16>
    %119 = vector.extract_strided_slice %106 {offsets = [8, 0], sizes = [8, 128], strides = [1, 1]} : vector<32x128xbf16> to vector<8x128xbf16>
    %cst_40 = arith.constant dense<0.000000e+00> : vector<16x128xf32>
    %120 = tpu.matmul %118, %119, %cst_40 {dimension_numbers = #tpu.dot_dimension_numbers<[1], [0], [0], [1], [0, 0, 1, 1], [], []>} : vector<16x8xbf16>, vector<8x128xbf16>, vector<16x128xf32> -> vector<16x128xf32>
    %121 = arith.addf %114, %120 : vector<16x128xf32>
    %122 = vector.extract_strided_slice %104 {offsets = [32, 0], sizes = [16, 16], strides = [1, 1]} : vector<64x16xbf16> to vector<16x16xbf16>
    %123 = vector.extract_strided_slice %79 {offsets = [0, 16], sizes = [16, 8], strides = [1, 1]} : vector<16x32xbf16> to vector<16x8xbf16>
    %cst_41 = arith.constant dense<0.000000e+00> : vector<16x8xf32>
    %124 = tpu.matmul %122, %123, %cst_41 {dimension_numbers = #tpu.dot_dimension_numbers<[1], [0], [0], [1], [0, 0, 1, 1], [], []>} : vector<16x16xbf16>, vector<16x8xbf16>, vector<16x8xf32> -> vector<16x8xf32>
    %125 = arith.truncf %124 : vector<16x8xf32> to vector<16x8xbf16>
    %126 = vector.extract_strided_slice %106 {offsets = [16, 0], sizes = [8, 128], strides = [1, 1]} : vector<32x128xbf16> to vector<8x128xbf16>
    %cst_42 = arith.constant dense<0.000000e+00> : vector<16x128xf32>
    %127 = tpu.matmul %125, %126, %cst_42 {dimension_numbers = #tpu.dot_dimension_numbers<[1], [0], [0], [1], [0, 0, 1, 1], [], []>} : vector<16x8xbf16>, vector<8x128xbf16>, vector<16x128xf32> -> vector<16x128xf32>
    %128 = arith.addf %121, %127 : vector<16x128xf32>
    %129 = vector.extract_strided_slice %104 {offsets = [48, 0], sizes = [16, 16], strides = [1, 1]} : vector<64x16xbf16> to vector<16x16xbf16>
    %130 = vector.extract_strided_slice %79 {offsets = [0, 24], sizes = [16, 8], strides = [1, 1]} : vector<16x32xbf16> to vector<16x8xbf16>
    %cst_43 = arith.constant dense<0.000000e+00> : vector<16x8xf32>
    %131 = tpu.matmul %129, %130, %cst_43 {dimension_numbers = #tpu.dot_dimension_numbers<[1], [0], [0], [1], [0, 0, 1, 1], [], []>} : vector<16x16xbf16>, vector<16x8xbf16>, vector<16x8xf32> -> vector<16x8xf32>
    %132 = arith.truncf %131 : vector<16x8xf32> to vector<16x8xbf16>
    %133 = vector.extract_strided_slice %106 {offsets = [24, 0], sizes = [8, 128], strides = [1, 1]} : vector<32x128xbf16> to vector<8x128xbf16>
    %cst_44 = arith.constant dense<0.000000e+00> : vector<16x128xf32>
    %134 = tpu.matmul %132, %133, %cst_44 {dimension_numbers = #tpu.dot_dimension_numbers<[1], [0], [0], [1], [0, 0, 1, 1], [], []>} : vector<16x8xbf16>, vector<8x128xbf16>, vector<16x128xf32> -> vector<16x128xf32>
    %135 = arith.addf %128, %134 : vector<16x128xf32>
    %136 = arith.addf %37, %135 : vector<16x128xf32>
    %137 = vector.extract_strided_slice %39 {offsets = [3, 0], sizes = [1, 128], strides = [1, 1]} : vector<8x128xf32> to vector<1x128xf32>
    %138 = vector.broadcast %137 : vector<1x128xf32> to vector<16x128xf32>
    %139 = arith.addf %136, %138 : vector<16x128xf32>
    %140 = vector.extract_strided_slice %39 {offsets = [4, 0], sizes = [1, 128], strides = [1, 1]} : vector<8x128xf32> to vector<1x128xf32>
    %141 = vector.extract_strided_slice %39 {offsets = [5, 0], sizes = [1, 128], strides = [1, 1]} : vector<8x128xf32> to vector<1x128xf32>
    %142 = vector.broadcast %4 : vector<1x128xf32> to vector<16x128xf32>
    %143 = arith.mulf %139, %142 : vector<16x128xf32>
    %cst_45 = arith.constant dense<0.000000e+00> : vector<16xf32>
    %144 = vector.multi_reduction <add>, %143, %cst_45 [1] : vector<16x128xf32> to vector<16xf32>
    %145 = vector.shape_cast %144 : vector<16xf32> to vector<16x1xf32>
    %cst_46 = arith.constant 3.125000e-02 : f32
    %146 = vector.broadcast %cst_46 : f32 to vector<16x1xf32>
    %147 = arith.mulf %145, %146 : vector<16x1xf32>
    %148 = vector.broadcast %147 : vector<16x1xf32> to vector<16x128xf32>
    %149 = arith.subf %143, %148 : vector<16x128xf32>
    %150 = vector.broadcast %4 : vector<1x128xf32> to vector<16x128xf32>
    %151 = arith.mulf %149, %150 : vector<16x128xf32>
    %152 = arith.mulf %151, %151 : vector<16x128xf32>
    %cst_47 = arith.constant dense<0.000000e+00> : vector<16xf32>
    %153 = vector.multi_reduction <add>, %152, %cst_47 [1] : vector<16x128xf32> to vector<16xf32>
    %154 = vector.shape_cast %153 : vector<16xf32> to vector<16x1xf32>
    %cst_48 = arith.constant 3.125000e-02 : f32
    %155 = vector.broadcast %cst_48 : f32 to vector<16x1xf32>
    %156 = arith.mulf %154, %155 : vector<16x1xf32>
    %cst_49 = arith.constant 9.99999974E-6 : f32
    %157 = vector.broadcast %cst_49 : f32 to vector<16x1xf32>
    %158 = arith.addf %156, %157 : vector<16x1xf32>
    %159 = math.rsqrt %158 : vector<16x1xf32>
    %160 = vector.broadcast %159 : vector<16x1xf32> to vector<16x128xf32>
    %161 = arith.mulf %151, %160 : vector<16x128xf32>
    %162 = vector.broadcast %140 : vector<1x128xf32> to vector<16x128xf32>
    %163 = arith.mulf %161, %162 : vector<16x128xf32>
    %164 = vector.broadcast %141 : vector<1x128xf32> to vector<16x128xf32>
    %165 = arith.addf %163, %164 : vector<16x128xf32>
    %166 = arith.truncf %165 : vector<16x128xf32> to vector<16x128xbf16>
    %167 = vector.extract_strided_slice %166 {offsets = [0, 0], sizes = [16, 32], strides = [1, 1]} : vector<16x128xbf16> to vector<16x32xbf16>
    %c0_50 = arith.constant 0 : index
    %c0_51 = arith.constant 0 : index
    %c0_52 = arith.constant 0 : index
    %168 = vector.load %arg9[%c0_50, %c0_51, %c0_52] : memref<2x32x128xbf16, #tpu.memory_space<vmem>>, vector<1x32x128xbf16>
    %169 = vector.shape_cast %168 : vector<1x32x128xbf16> to vector<32x128xbf16>
    %cst_53 = arith.constant dense<0.000000e+00> : vector<16x128xf32>
    %170 = tpu.matmul %167, %169, %cst_53 {dimension_numbers = #tpu.dot_dimension_numbers<[1], [0], [0], [1], [0, 0, 1, 1], [], []>} : vector<16x32xbf16>, vector<32x128xbf16>, vector<16x128xf32> -> vector<16x128xf32>
    %171 = vector.extract_strided_slice %39 {offsets = [6, 0], sizes = [1, 128], strides = [1, 1]} : vector<8x128xf32> to vector<1x128xf32>
    %172 = vector.broadcast %171 : vector<1x128xf32> to vector<16x128xf32>
    %173 = arith.addf %170, %172 : vector<16x128xf32>
    %cst_54 = arith.constant 1.702000e+00 : f32
    %174 = vector.broadcast %cst_54 : f32 to vector<16x128xf32>
    %175 = arith.mulf %174, %173 : vector<16x128xf32>
    %176 = arith.negf %175 : vector<16x128xf32>
    %177 = math.exp %176 : vector<16x128xf32>
    %cst_55 = arith.constant 1.000000e+00 : f32
    %178 = vector.broadcast %cst_55 : f32 to vector<16x128xf32>
    %179 = arith.addf %178, %177 : vector<16x128xf32>
    %180 = arith.divf %178, %179 : vector<16x128xf32>
    %181 = arith.mulf %173, %180 : vector<16x128xf32>
    %182 = vector.extract_strided_slice %181 {offsets = [0, 0], sizes = [16, 64], strides = [1, 1]} : vector<16x128xf32> to vector<16x64xf32>
    %183 = arith.truncf %182 : vector<16x64xf32> to vector<16x64xbf16>
    %c0_56 = arith.constant 0 : index
    %c0_57 = arith.constant 0 : index
    %c0_58 = arith.constant 0 : index
    %184 = vector.load %arg10[%c0_56, %c0_57, %c0_58] : memref<2x64x128xbf16, #tpu.memory_space<vmem>>, vector<1x64x128xbf16>
    %185 = vector.shape_cast %184 : vector<1x64x128xbf16> to vector<64x128xbf16>
    %cst_59 = arith.constant dense<0.000000e+00> : vector<16x128xf32>
    %186 = tpu.matmul %183, %185, %cst_59 {dimension_numbers = #tpu.dot_dimension_numbers<[1], [0], [0], [1], [0, 0, 1, 1], [], []>} : vector<16x64xbf16>, vector<64x128xbf16>, vector<16x128xf32> -> vector<16x128xf32>
    %187 = vector.extract_strided_slice %39 {offsets = [7, 0], sizes = [1, 128], strides = [1, 1]} : vector<8x128xf32> to vector<1x128xf32>
    %188 = vector.broadcast %187 : vector<1x128xf32> to vector<16x128xf32>
    %189 = arith.addf %186, %188 : vector<16x128xf32>
    %190 = arith.addf %139, %189 : vector<16x128xf32>
    %c1_60 = arith.constant 1 : index
    %c0_61 = arith.constant 0 : index
    %c0_62 = arith.constant 0 : index
    %191 = vector.load %arg6[%c1_60, %c0_61, %c0_62] : memref<2x8x128xf32, #tpu.memory_space<vmem>>, vector<1x8x128xf32>
    %192 = vector.shape_cast %191 : vector<1x8x128xf32> to vector<8x128xf32>
    %193 = vector.extract_strided_slice %192 {offsets = [0, 0], sizes = [1, 128], strides = [1, 1]} : vector<8x128xf32> to vector<1x128xf32>
    %194 = vector.extract_strided_slice %192 {offsets = [1, 0], sizes = [1, 128], strides = [1, 1]} : vector<8x128xf32> to vector<1x128xf32>
    %195 = vector.broadcast %4 : vector<1x128xf32> to vector<16x128xf32>
    %196 = arith.mulf %190, %195 : vector<16x128xf32>
    %cst_63 = arith.constant dense<0.000000e+00> : vector<16xf32>
    %197 = vector.multi_reduction <add>, %196, %cst_63 [1] : vector<16x128xf32> to vector<16xf32>
    %198 = vector.shape_cast %197 : vector<16xf32> to vector<16x1xf32>
    %cst_64 = arith.constant 3.125000e-02 : f32
    %199 = vector.broadcast %cst_64 : f32 to vector<16x1xf32>
    %200 = arith.mulf %198, %199 : vector<16x1xf32>
    %201 = vector.broadcast %200 : vector<16x1xf32> to vector<16x128xf32>
    %202 = arith.subf %196, %201 : vector<16x128xf32>
    %203 = vector.broadcast %4 : vector<1x128xf32> to vector<16x128xf32>
    %204 = arith.mulf %202, %203 : vector<16x128xf32>
    %205 = arith.mulf %204, %204 : vector<16x128xf32>
    %cst_65 = arith.constant dense<0.000000e+00> : vector<16xf32>
    %206 = vector.multi_reduction <add>, %205, %cst_65 [1] : vector<16x128xf32> to vector<16xf32>
    %207 = vector.shape_cast %206 : vector<16xf32> to vector<16x1xf32>
    %cst_66 = arith.constant 3.125000e-02 : f32
    %208 = vector.broadcast %cst_66 : f32 to vector<16x1xf32>
    %209 = arith.mulf %207, %208 : vector<16x1xf32>
    %cst_67 = arith.constant 9.99999974E-6 : f32
    %210 = vector.broadcast %cst_67 : f32 to vector<16x1xf32>
    %211 = arith.addf %209, %210 : vector<16x1xf32>
    %212 = math.rsqrt %211 : vector<16x1xf32>
    %213 = vector.broadcast %212 : vector<16x1xf32> to vector<16x128xf32>
    %214 = arith.mulf %204, %213 : vector<16x128xf32>
    %215 = vector.broadcast %193 : vector<1x128xf32> to vector<16x128xf32>
    %216 = arith.mulf %214, %215 : vector<16x128xf32>
    %217 = vector.broadcast %194 : vector<1x128xf32> to vector<16x128xf32>
    %218 = arith.addf %216, %217 : vector<16x128xf32>
    %219 = arith.truncf %218 : vector<16x128xf32> to vector<16x128xbf16>
    %220 = vector.extract_strided_slice %219 {offsets = [0, 0], sizes = [16, 32], strides = [1, 1]} : vector<16x128xbf16> to vector<16x32xbf16>
    %c1_68 = arith.constant 1 : index
    %c0_69 = arith.constant 0 : index
    %c0_70 = arith.constant 0 : index
    %221 = vector.load %arg7[%c1_68, %c0_69, %c0_70] : memref<2x32x128xbf16, #tpu.memory_space<vmem>>, vector<1x32x128xbf16>
    %222 = vector.shape_cast %221 : vector<1x32x128xbf16> to vector<32x128xbf16>
    %cst_71 = arith.constant dense<0.000000e+00> : vector<16x128xf32>
    %223 = tpu.matmul %220, %222, %cst_71 {dimension_numbers = #tpu.dot_dimension_numbers<[1], [0], [0], [1], [0, 0, 1, 1], [], []>} : vector<16x32xbf16>, vector<32x128xbf16>, vector<16x128xf32> -> vector<16x128xf32>
    %224 = vector.extract_strided_slice %192 {offsets = [2, 0], sizes = [1, 128], strides = [1, 1]} : vector<8x128xf32> to vector<1x128xf32>
    %225 = vector.broadcast %224 : vector<1x128xf32> to vector<16x128xf32>
    %226 = arith.addf %223, %225 : vector<16x128xf32>
    %227 = vector.extract_strided_slice %226 {offsets = [0, 0], sizes = [16, 32], strides = [1, 1]} : vector<16x128xf32> to vector<16x32xf32>
    %228 = arith.truncf %227 : vector<16x32xf32> to vector<16x32xbf16>
    %229 = vector.extract_strided_slice %226 {offsets = [0, 32], sizes = [16, 32], strides = [1, 1]} : vector<16x128xf32> to vector<16x32xf32>
    %230 = arith.truncf %229 : vector<16x32xf32> to vector<16x32xbf16>
    %231 = vector.extract_strided_slice %226 {offsets = [0, 64], sizes = [16, 32], strides = [1, 1]} : vector<16x128xf32> to vector<16x32xf32>
    %232 = arith.truncf %231 : vector<16x32xf32> to vector<16x32xbf16>
    %233 = vector.extract_strided_slice %228 {offsets = [0, 0], sizes = [16, 8], strides = [1, 1]} : vector<16x32xbf16> to vector<16x8xbf16>
    %234 = vector.extract_strided_slice %230 {offsets = [0, 0], sizes = [16, 8], strides = [1, 1]} : vector<16x32xbf16> to vector<16x8xbf16>
    %cst_72 = arith.constant dense<0.000000e+00> : vector<16x16xf32>
    %235 = tpu.matmul %233, %234, %cst_72 {dimension_numbers = #tpu.dot_dimension_numbers<[1], [1], [0], [0], [0, 0, 1, 0], [], []>} : vector<16x8xbf16>, vector<16x8xbf16>, vector<16x16xf32> -> vector<16x16xf32>
    %236 = vector.extract_strided_slice %228 {offsets = [0, 8], sizes = [16, 8], strides = [1, 1]} : vector<16x32xbf16> to vector<16x8xbf16>
    %237 = vector.extract_strided_slice %230 {offsets = [0, 8], sizes = [16, 8], strides = [1, 1]} : vector<16x32xbf16> to vector<16x8xbf16>
    %cst_73 = arith.constant dense<0.000000e+00> : vector<16x16xf32>
    %238 = tpu.matmul %236, %237, %cst_73 {dimension_numbers = #tpu.dot_dimension_numbers<[1], [1], [0], [0], [0, 0, 1, 0], [], []>} : vector<16x8xbf16>, vector<16x8xbf16>, vector<16x16xf32> -> vector<16x16xf32>
    %239 = vector.extract_strided_slice %228 {offsets = [0, 16], sizes = [16, 8], strides = [1, 1]} : vector<16x32xbf16> to vector<16x8xbf16>
    %240 = vector.extract_strided_slice %230 {offsets = [0, 16], sizes = [16, 8], strides = [1, 1]} : vector<16x32xbf16> to vector<16x8xbf16>
    %cst_74 = arith.constant dense<0.000000e+00> : vector<16x16xf32>
    %241 = tpu.matmul %239, %240, %cst_74 {dimension_numbers = #tpu.dot_dimension_numbers<[1], [1], [0], [0], [0, 0, 1, 0], [], []>} : vector<16x8xbf16>, vector<16x8xbf16>, vector<16x16xf32> -> vector<16x16xf32>
    %242 = vector.extract_strided_slice %228 {offsets = [0, 24], sizes = [16, 8], strides = [1, 1]} : vector<16x32xbf16> to vector<16x8xbf16>
    %243 = vector.extract_strided_slice %230 {offsets = [0, 24], sizes = [16, 8], strides = [1, 1]} : vector<16x32xbf16> to vector<16x8xbf16>
    %cst_75 = arith.constant dense<0.000000e+00> : vector<16x16xf32>
    %244 = tpu.matmul %242, %243, %cst_75 {dimension_numbers = #tpu.dot_dimension_numbers<[1], [1], [0], [0], [0, 0, 1, 0], [], []>} : vector<16x8xbf16>, vector<16x8xbf16>, vector<16x16xf32> -> vector<16x16xf32>
    %245 = tpu.concatenate %235, %238, %241, %244 in 0 : vector<16x16xf32>, vector<16x16xf32>, vector<16x16xf32>, vector<16x16xf32> -> vector<64x16xf32>
    %246 = arith.addf %245, %5 : vector<64x16xf32>
    %cst_76 = arith.constant dense<0xFF800000> : vector<64xf32>
    %247 = vector.multi_reduction <maximumf>, %246, %cst_76 [1] : vector<64x16xf32> to vector<64xf32>
    %248 = vector.shape_cast %247 : vector<64xf32> to vector<64x1xf32>
    %249 = vector.broadcast %248 : vector<64x1xf32> to vector<64x16xf32>
    %250 = arith.subf %246, %249 : vector<64x16xf32>
    %251 = math.exp %250 : vector<64x16xf32>
    %cst_77 = arith.constant dense<0.000000e+00> : vector<64xf32>
    %252 = vector.multi_reduction <add>, %251, %cst_77 [1] : vector<64x16xf32> to vector<64xf32>
    %253 = vector.shape_cast %252 : vector<64xf32> to vector<64x1xf32>
    %254 = tpu.reciprocal %253 {approx = true} : vector<64x1xf32> -> vector<64x1xf32>
    %255 = vector.broadcast %254 : vector<64x1xf32> to vector<64x16xf32>
    %256 = arith.mulf %251, %255 : vector<64x16xf32>
    %257 = arith.truncf %256 : vector<64x16xf32> to vector<64x16xbf16>
    %c1_78 = arith.constant 1 : index
    %c0_79 = arith.constant 0 : index
    %c0_80 = arith.constant 0 : index
    %258 = vector.load %arg8[%c1_78, %c0_79, %c0_80] : memref<2x32x128xbf16, #tpu.memory_space<vmem>>, vector<1x32x128xbf16>
    %259 = vector.shape_cast %258 : vector<1x32x128xbf16> to vector<32x128xbf16>
    %cst_81 = arith.constant 0.000000e+00 : f32
    %260 = vector.broadcast %cst_81 : f32 to vector<16x128xf32>
    %261 = vector.extract_strided_slice %257 {offsets = [0, 0], sizes = [16, 16], strides = [1, 1]} : vector<64x16xbf16> to vector<16x16xbf16>
    %262 = vector.extract_strided_slice %232 {offsets = [0, 0], sizes = [16, 8], strides = [1, 1]} : vector<16x32xbf16> to vector<16x8xbf16>
    %cst_82 = arith.constant dense<0.000000e+00> : vector<16x8xf32>
    %263 = tpu.matmul %261, %262, %cst_82 {dimension_numbers = #tpu.dot_dimension_numbers<[1], [0], [0], [1], [0, 0, 1, 1], [], []>} : vector<16x16xbf16>, vector<16x8xbf16>, vector<16x8xf32> -> vector<16x8xf32>
    %264 = arith.truncf %263 : vector<16x8xf32> to vector<16x8xbf16>
    %265 = vector.extract_strided_slice %259 {offsets = [0, 0], sizes = [8, 128], strides = [1, 1]} : vector<32x128xbf16> to vector<8x128xbf16>
    %cst_83 = arith.constant dense<0.000000e+00> : vector<16x128xf32>
    %266 = tpu.matmul %264, %265, %cst_83 {dimension_numbers = #tpu.dot_dimension_numbers<[1], [0], [0], [1], [0, 0, 1, 1], [], []>} : vector<16x8xbf16>, vector<8x128xbf16>, vector<16x128xf32> -> vector<16x128xf32>
    %267 = arith.addf %260, %266 : vector<16x128xf32>
    %268 = vector.extract_strided_slice %257 {offsets = [16, 0], sizes = [16, 16], strides = [1, 1]} : vector<64x16xbf16> to vector<16x16xbf16>
    %269 = vector.extract_strided_slice %232 {offsets = [0, 8], sizes = [16, 8], strides = [1, 1]} : vector<16x32xbf16> to vector<16x8xbf16>
    %cst_84 = arith.constant dense<0.000000e+00> : vector<16x8xf32>
    %270 = tpu.matmul %268, %269, %cst_84 {dimension_numbers = #tpu.dot_dimension_numbers<[1], [0], [0], [1], [0, 0, 1, 1], [], []>} : vector<16x16xbf16>, vector<16x8xbf16>, vector<16x8xf32> -> vector<16x8xf32>
    %271 = arith.truncf %270 : vector<16x8xf32> to vector<16x8xbf16>
    %272 = vector.extract_strided_slice %259 {offsets = [8, 0], sizes = [8, 128], strides = [1, 1]} : vector<32x128xbf16> to vector<8x128xbf16>
    %cst_85 = arith.constant dense<0.000000e+00> : vector<16x128xf32>
    %273 = tpu.matmul %271, %272, %cst_85 {dimension_numbers = #tpu.dot_dimension_numbers<[1], [0], [0], [1], [0, 0, 1, 1], [], []>} : vector<16x8xbf16>, vector<8x128xbf16>, vector<16x128xf32> -> vector<16x128xf32>
    %274 = arith.addf %267, %273 : vector<16x128xf32>
    %275 = vector.extract_strided_slice %257 {offsets = [32, 0], sizes = [16, 16], strides = [1, 1]} : vector<64x16xbf16> to vector<16x16xbf16>
    %276 = vector.extract_strided_slice %232 {offsets = [0, 16], sizes = [16, 8], strides = [1, 1]} : vector<16x32xbf16> to vector<16x8xbf16>
    %cst_86 = arith.constant dense<0.000000e+00> : vector<16x8xf32>
    %277 = tpu.matmul %275, %276, %cst_86 {dimension_numbers = #tpu.dot_dimension_numbers<[1], [0], [0], [1], [0, 0, 1, 1], [], []>} : vector<16x16xbf16>, vector<16x8xbf16>, vector<16x8xf32> -> vector<16x8xf32>
    %278 = arith.truncf %277 : vector<16x8xf32> to vector<16x8xbf16>
    %279 = vector.extract_strided_slice %259 {offsets = [16, 0], sizes = [8, 128], strides = [1, 1]} : vector<32x128xbf16> to vector<8x128xbf16>
    %cst_87 = arith.constant dense<0.000000e+00> : vector<16x128xf32>
    %280 = tpu.matmul %278, %279, %cst_87 {dimension_numbers = #tpu.dot_dimension_numbers<[1], [0], [0], [1], [0, 0, 1, 1], [], []>} : vector<16x8xbf16>, vector<8x128xbf16>, vector<16x128xf32> -> vector<16x128xf32>
    %281 = arith.addf %274, %280 : vector<16x128xf32>
    %282 = vector.extract_strided_slice %257 {offsets = [48, 0], sizes = [16, 16], strides = [1, 1]} : vector<64x16xbf16> to vector<16x16xbf16>
    %283 = vector.extract_strided_slice %232 {offsets = [0, 24], sizes = [16, 8], strides = [1, 1]} : vector<16x32xbf16> to vector<16x8xbf16>
    %cst_88 = arith.constant dense<0.000000e+00> : vector<16x8xf32>
    %284 = tpu.matmul %282, %283, %cst_88 {dimension_numbers = #tpu.dot_dimension_numbers<[1], [0], [0], [1], [0, 0, 1, 1], [], []>} : vector<16x16xbf16>, vector<16x8xbf16>, vector<16x8xf32> -> vector<16x8xf32>
    %285 = arith.truncf %284 : vector<16x8xf32> to vector<16x8xbf16>
    %286 = vector.extract_strided_slice %259 {offsets = [24, 0], sizes = [8, 128], strides = [1, 1]} : vector<32x128xbf16> to vector<8x128xbf16>
    %cst_89 = arith.constant dense<0.000000e+00> : vector<16x128xf32>
    %287 = tpu.matmul %285, %286, %cst_89 {dimension_numbers = #tpu.dot_dimension_numbers<[1], [0], [0], [1], [0, 0, 1, 1], [], []>} : vector<16x8xbf16>, vector<8x128xbf16>, vector<16x128xf32> -> vector<16x128xf32>
    %288 = arith.addf %281, %287 : vector<16x128xf32>
    %289 = arith.addf %190, %288 : vector<16x128xf32>
    %290 = vector.extract_strided_slice %192 {offsets = [3, 0], sizes = [1, 128], strides = [1, 1]} : vector<8x128xf32> to vector<1x128xf32>
    %291 = vector.broadcast %290 : vector<1x128xf32> to vector<16x128xf32>
    %292 = arith.addf %289, %291 : vector<16x128xf32>
    %293 = vector.extract_strided_slice %192 {offsets = [4, 0], sizes = [1, 128], strides = [1, 1]} : vector<8x128xf32> to vector<1x128xf32>
    %294 = vector.extract_strided_slice %192 {offsets = [5, 0], sizes = [1, 128], strides = [1, 1]} : vector<8x128xf32> to vector<1x128xf32>
    %295 = vector.broadcast %4 : vector<1x128xf32> to vector<16x128xf32>
    %296 = arith.mulf %292, %295 : vector<16x128xf32>
    %cst_90 = arith.constant dense<0.000000e+00> : vector<16xf32>
    %297 = vector.multi_reduction <add>, %296, %cst_90 [1] : vector<16x128xf32> to vector<16xf32>
    %298 = vector.shape_cast %297 : vector<16xf32> to vector<16x1xf32>
    %cst_91 = arith.constant 3.125000e-02 : f32
    %299 = vector.broadcast %cst_91 : f32 to vector<16x1xf32>
    %300 = arith.mulf %298, %299 : vector<16x1xf32>
    %301 = vector.broadcast %300 : vector<16x1xf32> to vector<16x128xf32>
    %302 = arith.subf %296, %301 : vector<16x128xf32>
    %303 = vector.broadcast %4 : vector<1x128xf32> to vector<16x128xf32>
    %304 = arith.mulf %302, %303 : vector<16x128xf32>
    %305 = arith.mulf %304, %304 : vector<16x128xf32>
    %cst_92 = arith.constant dense<0.000000e+00> : vector<16xf32>
    %306 = vector.multi_reduction <add>, %305, %cst_92 [1] : vector<16x128xf32> to vector<16xf32>
    %307 = vector.shape_cast %306 : vector<16xf32> to vector<16x1xf32>
    %cst_93 = arith.constant 3.125000e-02 : f32
    %308 = vector.broadcast %cst_93 : f32 to vector<16x1xf32>
    %309 = arith.mulf %307, %308 : vector<16x1xf32>
    %cst_94 = arith.constant 9.99999974E-6 : f32
    %310 = vector.broadcast %cst_94 : f32 to vector<16x1xf32>
    %311 = arith.addf %309, %310 : vector<16x1xf32>
    %312 = math.rsqrt %311 : vector<16x1xf32>
    %313 = vector.broadcast %312 : vector<16x1xf32> to vector<16x128xf32>
    %314 = arith.mulf %304, %313 : vector<16x128xf32>
    %315 = vector.broadcast %293 : vector<1x128xf32> to vector<16x128xf32>
    %316 = arith.mulf %314, %315 : vector<16x128xf32>
    %317 = vector.broadcast %294 : vector<1x128xf32> to vector<16x128xf32>
    %318 = arith.addf %316, %317 : vector<16x128xf32>
    %319 = arith.truncf %318 : vector<16x128xf32> to vector<16x128xbf16>
    %320 = vector.extract_strided_slice %319 {offsets = [0, 0], sizes = [16, 32], strides = [1, 1]} : vector<16x128xbf16> to vector<16x32xbf16>
    %c1_95 = arith.constant 1 : index
    %c0_96 = arith.constant 0 : index
    %c0_97 = arith.constant 0 : index
    %321 = vector.load %arg9[%c1_95, %c0_96, %c0_97] : memref<2x32x128xbf16, #tpu.memory_space<vmem>>, vector<1x32x128xbf16>
    %322 = vector.shape_cast %321 : vector<1x32x128xbf16> to vector<32x128xbf16>
    %cst_98 = arith.constant dense<0.000000e+00> : vector<16x128xf32>
    %323 = tpu.matmul %320, %322, %cst_98 {dimension_numbers = #tpu.dot_dimension_numbers<[1], [0], [0], [1], [0, 0, 1, 1], [], []>} : vector<16x32xbf16>, vector<32x128xbf16>, vector<16x128xf32> -> vector<16x128xf32>
    %324 = vector.extract_strided_slice %192 {offsets = [6, 0], sizes = [1, 128], strides = [1, 1]} : vector<8x128xf32> to vector<1x128xf32>
    %325 = vector.broadcast %324 : vector<1x128xf32> to vector<16x128xf32>
    %326 = arith.addf %323, %325 : vector<16x128xf32>
    %cst_99 = arith.constant 1.702000e+00 : f32
    %327 = vector.broadcast %cst_99 : f32 to vector<16x128xf32>
    %328 = arith.mulf %327, %326 : vector<16x128xf32>
    %329 = arith.negf %328 : vector<16x128xf32>
    %330 = math.exp %329 : vector<16x128xf32>
    %cst_100 = arith.constant 1.000000e+00 : f32
    %331 = vector.broadcast %cst_100 : f32 to vector<16x128xf32>
    %332 = arith.addf %331, %330 : vector<16x128xf32>
    %333 = arith.divf %331, %332 : vector<16x128xf32>
    %334 = arith.mulf %326, %333 : vector<16x128xf32>
    %335 = vector.extract_strided_slice %334 {offsets = [0, 0], sizes = [16, 64], strides = [1, 1]} : vector<16x128xf32> to vector<16x64xf32>
    %336 = arith.truncf %335 : vector<16x64xf32> to vector<16x64xbf16>
    %c1_101 = arith.constant 1 : index
    %c0_102 = arith.constant 0 : index
    %c0_103 = arith.constant 0 : index
    %337 = vector.load %arg10[%c1_101, %c0_102, %c0_103] : memref<2x64x128xbf16, #tpu.memory_space<vmem>>, vector<1x64x128xbf16>
    %338 = vector.shape_cast %337 : vector<1x64x128xbf16> to vector<64x128xbf16>
    %cst_104 = arith.constant dense<0.000000e+00> : vector<16x128xf32>
    %339 = tpu.matmul %336, %338, %cst_104 {dimension_numbers = #tpu.dot_dimension_numbers<[1], [0], [0], [1], [0, 0, 1, 1], [], []>} : vector<16x64xbf16>, vector<64x128xbf16>, vector<16x128xf32> -> vector<16x128xf32>
    %340 = vector.extract_strided_slice %192 {offsets = [7, 0], sizes = [1, 128], strides = [1, 1]} : vector<8x128xf32> to vector<1x128xf32>
    %341 = vector.broadcast %340 : vector<1x128xf32> to vector<16x128xf32>
    %342 = arith.addf %339, %341 : vector<16x128xf32>
    %343 = arith.addf %292, %342 : vector<16x128xf32>
    %344 = arith.truncf %343 : vector<16x128xf32> to vector<16x128xbf16>
    %c0_105 = arith.constant 0 : index
    %c0_106 = arith.constant 0 : index
    %345 = vector.load %arg11[%c0_105, %c0_106] : memref<16x128xbf16, #tpu.memory_space<vmem>>, vector<16x128xbf16>
    tpu.vector_store %arg11[%c0_105, %c0_106], %344 {strides = array<i32>} : memref<16x128xbf16, #tpu.memory_space<vmem>>, vector<16x128xbf16>,
    return
  }
  func.func @transform_0(%arg0: i32) -> (i32, i32) {
    %c0_i32 = arith.constant 0 : i32
    %c0_i32_0 = arith.constant 0 : i32
    %c0_i32_1 = arith.constant 0 : i32
    return %c0_i32, %c0_i32_0 : i32, i32
  }
  func.func @transform_1(%arg0: i32) -> (i32, i32) {
    %c0_i32 = arith.constant 0 : i32
    %c0_i32_0 = arith.constant 0 : i32
    %c0_i32_1 = arith.constant 0 : i32
    return %c0_i32, %c0_i32_0 : i32, i32
  }
  func.func @transform_2(%arg0: i32) -> (i32, i32) {
    %c0_i32 = arith.constant 0 : i32
    %c0_i32_0 = arith.constant 0 : i32
    %c0_i32_1 = arith.constant 0 : i32
    return %c0_i32, %c0_i32_0 : i32, i32
  }
  func.func @transform_3(%arg0: i32) -> (i32, i32) {
    %c0_i32 = arith.constant 0 : i32
    %c0_i32_0 = arith.constant 0 : i32
    %c0_i32_1 = arith.constant 0 : i32
    return %c0_i32, %c0_i32_0 : i32, i32
  }
  func.func @transform_4(%arg0: i32) -> (i32, i32) {
    %c0_i32 = arith.constant 0 : i32
    %c0_i32_0 = arith.constant 0 : i32
    %c0_i32_1 = arith.constant 0 : i32
    return %c0_i32, %c0_i32_0 : i32, i32
  }
  func.func @transform_5(%arg0: i32) -> (i32, i32, i32) {
    %c0_i32 = arith.constant 0 : i32
    %c0_i32_0 = arith.constant 0 : i32
    %c0_i32_1 = arith.constant 0 : i32
    %c0_i32_2 = arith.constant 0 : i32
    return %c0_i32, %c0_i32_0, %c0_i32_1 : i32, i32, i32
  }
  func.func @transform_6(%arg0: i32) -> (i32, i32, i32) {
    %c0_i32 = arith.constant 0 : i32
    %c0_i32_0 = arith.constant 0 : i32
    %c0_i32_1 = arith.constant 0 : i32
    %c0_i32_2 = arith.constant 0 : i32
    return %c0_i32, %c0_i32_0, %c0_i32_1 : i32, i32, i32
  }
  func.func @transform_7(%arg0: i32) -> (i32, i32, i32) {
    %c0_i32 = arith.constant 0 : i32
    %c0_i32_0 = arith.constant 0 : i32
    %c0_i32_1 = arith.constant 0 : i32
    %c0_i32_2 = arith.constant 0 : i32
    return %c0_i32, %c0_i32_0, %c0_i32_1 : i32, i32, i32
  }
  func.func @transform_8(%arg0: i32) -> (i32, i32, i32) {
    %c0_i32 = arith.constant 0 : i32
    %c0_i32_0 = arith.constant 0 : i32
    %c0_i32_1 = arith.constant 0 : i32
    %c0_i32_2 = arith.constant 0 : i32
    return %c0_i32, %c0_i32_0, %c0_i32_1 : i32, i32, i32
  }
  func.func @transform_9(%arg0: i32) -> (i32, i32, i32) {
    %c0_i32 = arith.constant 0 : i32
    %c0_i32_0 = arith.constant 0 : i32
    %c0_i32_1 = arith.constant 0 : i32
    %c0_i32_2 = arith.constant 0 : i32
    return %c0_i32, %c0_i32_0, %c0_i32_1 : i32, i32, i32
  }
  func.func @transform_10(%arg0: i32) -> (i32, i32) {
    %c0_i32 = arith.constant 0 : i32
    %c0_i32_0 = arith.constant 0 : i32
    %c0_i32_1 = arith.constant 0 : i32
    return %c0_i32, %c0_i32_0 : i32, i32
  }
}

</mosaic_0001>

<bundles_post_ra>
// kernel: clip_vision_tower_forward.1
= control target key start
LH: loop header
LB: loop body
LE: loop exit
PB: predicated region body
PF: predicated region fallthrough
CT: control target
= control target key end

     0   :  { %v2790_v0 = vmov 0   ;;  %vm157_vm0 = vcmask 523264   ;;  %v2791_v15 = vmov 0.0   ;;  %v36_v16 = vlaneseq  ;;  %s2793_s29 = smov 88   ;;  %s2794_s30 = smov 96   ;;  %s3415_s1 = inlined_call_operand.vmem [shape: bf16[192,128], index: 1, kind: input, shape index: {}]   ;;  %s3416_s0 = inlined_call_operand.vmem [shape: bf16[16,192], index: 0, kind: input, shape index: {}]   ;;  %s3417_s2 = inlined_call_operand.vmem [shape: f32[8,128], index: 2, kind: input, shape index: {}]   ;;  %s3418_s3 = inlined_call_operand.vmem [shape: f32[8,128], index: 3, kind: input, shape index: {}]   ;;  %s3419_s6 = inlined_call_operand.vmem [shape: bf16[2,32,128], index: 6, kind: input, shape index: {}]   ;;  %s3420_s5 = inlined_call_operand.vmem [shape: f32[2,8,128], index: 5, kind: input, shape index: {}]   ;;  %s3421_s4 = inlined_call_operand.vmem [shape: f32[64,16], index: 4, kind: input, shape index: {}]   ;;  %s3422_s7 = inlined_call_operand.vmem [shape: bf16[2,32,128], index: 7, kind: input, shape index: {}]   ;;  %s3423_s8 = inlined_call_operand.vmem [shape: bf16[2,32,128], index: 8, kind: input, shape index: {}]   ;;  %s3424_s9 = inlined_call_operand.vmem [shape: bf16[2,64,128], index: 9, kind: input, shape index: {}]   ;;  %s3425_s10 = inlined_call_operand.vmem [shape: bf16[16,128], index: 10, kind: output, shape index: {}]  }
   0x1   :  { %161 = vmatprep.subr.bf16.mxu0 %v2790_v0  ;;  %v2659_v1 = vld [vmem:[%s3415_s1 + $0x38] sm:$0xff]   ;;  %v2660_v2 = vld [vmem:[%s3415_s1 + $0x30] sm:$0xff]   ;;  %v2661_v3 = vld [vmem:[%s3415_s1 + $0x28] sm:$0xff]   ;;  %2445 = vmatprep.subr.bf16.mxu1 %v2791_v15  ;;  %vm2792_vm2 = vmmov 0   ;;  %vm302_vm3 = vcmask 261120   ;;  %s2795_s11 = smov 120  }
   0x2   :  { %162 = vmatpush1.bf16.msra.mxu0 %v2659_v1  ;;  %v2662_v4 = vld [vmem:[%s3415_s1 + $0x20] sm:$0xff]   ;;  %v2663_v6 = vld [vmem:[%s3415_s1 + $0x18] sm:$0xff]   ;;  %v2664_v7 = vld [vmem:[%s3415_s1 + $0x10] sm:$0xff]   ;;  %v37_v17 = vand.u32 127, %v36_v16  ;;  %2449 = vmatprep.mubr.msk.bf16.mxu1 %vm2792_vm2, %v2791_v15  ;;  %s2796_s12 = smov 112   ;;  %s2797_s13 = smov 80  }
   0x3   :  { %163 = vmatprep.subr.bf16.mxu0 %v2790_v0  ;;  %v2673_v5 = vld [vmem:[%s3416_s0 + $0x4] ss:$8 sps:$4 sm:$0xff]   ;;  %v2667_v10 = vld [vmem:[%s3415_s1 + $0x58] sm:$0xff]   ;;  %v2668_v11 = vld [vmem:[%s3415_s1 + $0x50] sm:$0xff]   ;;  %s2798_s14 = smov 104   ;;  %s2799_s15 = smov 72  }
   0x4   :  { %2292 = vmatprep.mubr.msk.bf16.mxu0 %vm157_vm0, %v2673_v5  ;;  %v2665_v8 = vld [vmem:[%s3415_s1 + $0x8] sm:$0xff]   ;;  %v2666_v9 = vld [vmem:[%s3415_s1] sm:$0xff]   ;;  %vm38_vm1 = vcmp.lt.s32.totalorder %v37_v17, 32  ;;  %vm351_vm4 = vcmask 64512   ;;  %vm560_vm5 = vcmask 130048   ;;  %vm756_vm6 = vcmask 1043456  }
   0x5   :  { %v2669_v12 = vld [vmem:[%s3415_s1 + $0x48] sm:$0xff]   ;;  %v2670_v13 = vld [vmem:[%s3415_s1 + $0x40] sm:$0xff]   ;;  %v2909_v20 = vsel %vm38_vm1, 1.0, %v2791_v15  ;;  %s2800_s1 = smov 64   ;;  %s2802_s20 = smov 48  }
   0x6   :  { %164 = vmatpush1.bf16.msra.mxu0 %v2660_v2  ;;  %v2671_v14 = vld [vmem:[%s3416_s0] ss:$8 sps:$4 sm:$0xff]   ;;  %s2803_s21 = smov 40  }
   0x7   :  { %165 = vmatprep.subr.bf16.mxu0 %v2790_v0  ;;  %v75_v18 = vld [vmem:[%s3417_s2] sm:$0xff]  ;;  %v2674_v2 = vld [vmem:[%s3419_s6 + $0x8] sm:$0xff]   ;;  %s2801_s2 = smov 56  }
   0x8   :  { %v2293_v45 = vld [vmem:[%s3418_s3] ss:$0 sm:$0xff]  ;;  %v2294_v47 = vld [vmem:[%s3418_s3 + $0x1] ss:$0 sm:$0xff]  ;;  %2446 = vmatpush3.bf16.msra.mxu1 %v2674_v2 }
   0x9   :  { %2447 = vmatprep.subr.bf16.mxu1 %v2791_v15 }
   0xa   :  { %166 = vmatpush1.bf16.msra.mxu0 %v2661_v3  ;;  %v2675_v3 = vld [vmem:[%s3419_s6] sm:$0xff]  }
   0xb   :  { %167 = vmatprep.subr.bf16.mxu0 %v2790_v0 }
   0xc   :  { %2448 = vmatpush3.bf16.msra.mxu1 %v2675_v3 }
   0xd   :  { %2453 = vmatprep.subr.bf16.mxu1 %v2791_v15 }
   0xe   :  { %168 = vmatpush1.bf16.msra.mxu0 %v2662_v4 }
   0xf   :  { %169 = vmatprep.subr.bf16.mxu0 %v2790_v0 }
  0x12   :  { %170 = vmatpush1.bf16.msra.mxu0 %v2663_v6 }
  0x13   :  { %171 = vmatprep.subr.bf16.mxu0 %v2790_v0 }
  0x16   :  { %172 = vmatpush1.bf16.msra.mxu0 %v2664_v7 }
  0x17   :  { %173 = vmatprep.subr.bf16.mxu0 %v2790_v0 }
  0x1a   :  { %174 = vmatpush1.bf16.msra.mxu0 %v2665_v8 }
  0x1b   :  { %175 = vmatprep.subr.bf16.mxu0 %v2790_v0 }
  0x1e   :  { %176 = vmatpush1.bf16.msra.mxu0 %v2666_v9 }
  0x1f   :  { %185 = vmatprep.subr.bf16.mxu0 %v2790_v0 }
  0x22   :  { %186 = vmatpush2.bf16.msra.mxu0 %v2667_v10  ;;  %v2944_v10 = vshrl.u32 %v36_v16, 7 }
  0x23   :  { %187 = vmatprep.subr.bf16.mxu0 %v2790_v0 }
  0x26   :  { %188 = vmatpush2.bf16.msra.mxu0 %v2668_v11  ;;  %v271_v11 = vsub.s32 0, %v2944_v10 }
  0x27   :  { %189 = vmatprep.subr.bf16.mxu0 %v2790_v0 }
  0x2a   :  { %190 = vmatpush2.bf16.msra.mxu0 %v2669_v12  ;;  %v2950_v12 = vld [vmem:[%s3420_s5] sm:$0xff] }
  0x2b   :  { %191 = vmatprep.subr.bf16.mxu0 %v2790_v0  ;;  %v272_v17 = vrot.slane %v2950_v12, %v271_v11 }
  0x2e   :  { %192 = vmatpush2.bf16.msra.mxu0 %v2670_v13 }
  0x2f   :  { %2495 = vmatprep.subr.bf16.mxu0 %v2791_v15 }
  0x31   :  { %194 = vmatmul.mubr.bf16.vlgmr.msra.gmra.mxu0 %v2671_v14 }
  0x32   :  { %2497 = vmatprep.mubr.msk.bf16.mxu0 %vm2792_vm2, %v2791_v15 }
  0xf1   :  { %v195_v19 = vpop.f32.mrf.mxu0 }
  0xf2   :  { %v196_v21 = vadd.f32 %v195_v19, %v75_v18 }
  0xf3   :  { %v197_v22 = vpop.f32.mrf.mxu0 }
  0xf4   :  { %v204_v23 = vmul.f32 %v2909_v20, %v196_v21 }
  0xf5   :  { %v198_v24 = vpop.f32.mrf.mxu0 }
  0xf6   :  { %v199_v25 = vadd.f32 %v198_v24, %v75_v18  ;;  %206 = vadd.xlane.f32.xlu0 %v204_v23  ;;  %v277_v18 = vsub.s32 1, %v2944_v10 }
  0xf7   :  { %v200_v26 = vpop.f32.mrf.mxu0 }
  0xf8   :  { %v205_v27 = vmul.f32 %v2909_v20, %v199_v25  ;;  %v278_v16 = vrot.slane %v2950_v12, %v277_v18 }
  0xfa   :  { %208 = vadd.xlane.f32.xlu0 %v205_v27 }
 0x17f   :  { %v207_v28 = vpop.xlane.xlu0 %206 }
 0x180   :  { %v210_v29 = vmul.f32 0.03125, %v207_v28 }
 0x182   :  { %v212_v30 = vsub.f32 %v204_v23, %v210_v29 }
 0x183   :  { %v209_v31 = vpop.xlane.xlu0 %208 }
 0x184   :  { %v211_v32 = vmul.f32 0.03125, %v209_v31  ;;  %v214_v33 = vmul.f32 %v2909_v20, %v212_v30 }
 0x186   :  { %v213_v34 = vsub.f32 %v205_v27, %v211_v32  ;;  %v216_v35 = vmul.f32 %v214_v33, %v214_v33  ;;  %v288_v27 = vsub.s32 2, %v2944_v10 }
 0x188   :  { %218 = vadd.xlane.f32.xlu1 %v216_v35  ;;  %v215_v36 = vmul.f32 %v2909_v20, %v213_v34  ;;  %v289_v29 = vrot.slane %v2950_v12, %v288_v27 }
 0x18a   :  { %v217_v37 = vmul.f32 %v215_v36, %v215_v36 }
 0x18c   :  { %220 = vadd.xlane.f32.xlu1 %v217_v37 }
 0x211   :  { %v219_v38 = vpop.xlane.xlu1 %218 }
 0x212   :  { %v222_v39 = vmul.f32 0.03125, %v219_v38 }
 0x214   :  { %v224_v40 = vadd.f32 1e-05, %v222_v39 }
 0x215   :  { %v221_v41 = vpop.xlane.xlu1 %220 }
 0x216   :  { %2690 = vrsqrt.f32 %v224_v40  ;;  %v223_v42 = vmul.f32 0.03125, %v221_v41 }
 0x218   :  { %v225_v43 = vadd.f32 1e-05, %v223_v42 }
 0x21a   :  { %2692 = vrsqrt.f32 %v225_v43 }
 0x223   :  { %v2691_v44 = vpop.eup %2690 }
 0x224   :  { %v228_v46 = vmul.f32 %v2691_v44, %v214_v33 }
 0x226   :  { %v234_v48 = vmul.f32 %v2293_v45, %v228_v46 }
 0x227   :  { %v2693_v49 = vpop.eup %2692 }
 0x228   :  { %v2921_v50 = vadd.f32 %v2294_v47, %v234_v48  ;;  %v229_v51 = vmul.f32 %v2693_v49, %v215_v36 }
 0x22a   :  { %v243_v52 = vmul.f32 %v2909_v20, %v2921_v50  ;;  %v235_v53 = vmul.f32 %v2293_v45, %v229_v51 }
 0x22c   :  { %245 = vadd.xlane.f32.xlu0 %v243_v52  ;;  %v2925_v54 = vadd.f32 %v2294_v47, %v235_v53  ;;  %v3006_v47 = vld [vmem:[%s3421_s4] sm:$0xff] }
 0x22e   :  { %v244_v55 = vmul.f32 %v2909_v20, %v2925_v54 }
 0x230   :  { %247 = vadd.xlane.f32.xlu1 %v244_v55 }
 0x2b5   :  { %v246_v56 = vpop.xlane.xlu0 %245 }
 0x2b6   :  { %v249_v57 = vmul.f32 0.03125, %v246_v56 }
 0x2b8   :  { %v251_v58 = vsub.f32 %v243_v52, %v249_v57  ;;  %v3012_v52 = vld [vmem:[%s3421_s4 + $0x8] sm:$0xff] }
 0x2b9   :  { %v248_v59 = vpop.xlane.xlu1 %247 }
 0x2ba   :  { %v250_v60 = vmul.f32 0.03125, %v248_v59  ;;  %v253_v61 = vmul.f32 %v2909_v20, %v251_v58  ;;  %v3019_v58 = vld [vmem:[%s3421_s4 + $0x10] sm:$0xff] }
 0x2bc   :  { %v252_v62 = vsub.f32 %v244_v55, %v250_v60  ;;  %v255_v63 = vmul.f32 %v253_v61, %v253_v61 }
 0x2be   :  { %257 = vadd.xlane.f32.xlu0 %v255_v63  ;;  %v254_v0 = vmul.f32 %v2909_v20, %v252_v62  ;;  %v3026_v63 = vld [vmem:[%s3421_s4 + $0x18] sm:$0xff] }
 0x2c0   :  { %v256_v1 = vmul.f32 %v254_v0, %v254_v0 }
 0x2c2   :  { %259 = vadd.xlane.f32.xlu1 %v256_v1 }
 0x347   :  { %v258_v4 = vpop.xlane.xlu0 %257 }
 0x348   :  { %v261_v5 = vmul.f32 0.03125, %v258_v4 }
 0x34a   :  { %v263_v6 = vadd.f32 1e-05, %v261_v5 }
 0x34b   :  { %v260_v7 = vpop.xlane.xlu1 %259 }
 0x34c   :  { %2694 = vrsqrt.f32 %v263_v6  ;;  %v262_v8 = vmul.f32 0.03125, %v260_v7 }
 0x34e   :  { %v264_v9 = vadd.f32 1e-05, %v262_v8 }
 0x350   :  { %2696 = vrsqrt.f32 %v264_v9 }
 0x359   :  { %v2695_v13 = vpop.eup %2694 }
 0x35a   :  { %v267_v14 = vmul.f32 %v2695_v13, %v253_v61 }
 0x35c   :  { %v273_v22 = vmul.f32 %v272_v17, %v267_v14 }
 0x35d   :  { %v2697_v19 = vpop.eup %2696 }
 0x35e   :  { %v268_v21 = vmul.f32 %v2697_v19, %v254_v0  ;;  %v279_v24 = vadd.f32 %v278_v16, %v273_v22 }
 0x360   :  { %v274_v23 = vmul.f32 %v272_v17, %v268_v21 }
 0x362   :  { %v280_v25 = vadd.f32 %v278_v16, %v274_v23 }
 0x364   :  { %v281_v26 = vpack.c.bf16 %v280_v25, %v279_v24 }
 0x366   :  { %2450 = vmatmul.mubr.msk.bf16.vlgmr.msra.gmra.mxu1 %vm302_vm3, %v281_v26 }
 0x367   :  { %2455 = vmatprep.mubr.msk.bf16.mxu1 %vm2792_vm2, %v2791_v15 }
 0x426   :  { %v340_v28 = vpop.f32.mrf.mxu1 }
 0x427   :  { %v341_v32 = vadd.f32 %v340_v28, %v289_v29 }
 0x428   :  { %v2451_v30 = vpop.f32.mrf.mxu1 }
 0x42a   :  { %v343_v31 = vpop.f32.mrf.mxu1 }
 0x42b   :  { %v344_v33 = vadd.f32 %v343_v31, %v289_v29 }
 0x42c   :  { %v2452_v34 = vpop.f32.mrf.mxu1 }
 0x42d   :  { %v2966_v35 = vpack.c.bf16 %v344_v33, %v341_v32 }
 0x42f   :  { %401 = vrot.lane.b32.xlu1 %v2966_v35, %s2793_s29  ;;  %349 = vrot.lane.b32.xlu0 %v2966_v35, %s2794_s30 }
 0x433   :  { %399 = vrot.lane.b32.xlu1 %v2966_v35, %s2795_s11  ;;  %450 = vrot.lane.b32.xlu0 %v2966_v35, %s2796_s12 }
 0x437   :  { %452 = vrot.lane.b32.xlu1 %v2966_v35, %s2797_s13  ;;  %501 = vrot.lane.b32.xlu0 %v2966_v35, %s2798_s14 }
 0x43b   :  { %503 = vrot.lane.b32.xlu1 %v2966_v35, %s2799_s15 }
 0x4a1   :  { %v350_v36 = vpop.permute.xlu0 %349  ;;  %v402_v38 = vpop.permute.xlu1 %401 }
 0x4a2   :  { %v356_v37 = vsel %vm351_vm4, %v350_v36, 0  ;;  %v407_v40 = vsel %vm351_vm4, %v402_v38, 0 }
 0x4a3   :  { %2454 = vmatpush3.bf16.xpose.msra.mxu1 %v356_v37 }
 0x4a4   :  { %2459 = vmatprep.subr.bf16.mxu1 %v2791_v15 }
 0x4a5   :  { %v400_v39 = vpop.permute.xlu1 %399  ;;  %v451_v44 = vpop.permute.xlu0 %450 }
 0x4a9   :  { %v453_v41 = vpop.permute.xlu1 %452  ;;  %v502_v46 = vpop.permute.xlu0 %501 }
 0x4aa   :  { %2456 = vmatmul.mubr.msk.bf16.vlgmr.msra.gmra.mxu1 %vm351_vm4, %v2966_v35  ;;  %v458_v42 = vsel %vm351_vm4, %v453_v41, 0  ;;  %v3042_v41 = vld [vmem:[%s3421_s4 + $0x20] sm:$0xff] }
 0x4ab   :  { %2460 = vmatpush3.bf16.xpose.msra.mxu1 %v407_v40  ;;  %2461 = vmatprep.mubr.msk.bf16.mxu1 %vm2792_vm2, %v2791_v15 }
 0x4ac   :  { %2465 = vmatprep.subr.bf16.mxu1 %v2791_v15 }
 0x4ad   :  { %v504_v43 = vpop.permute.xlu1 %503 }
 0x4ae   :  { %v509_v45 = vsel %vm351_vm4, %v504_v43, 0  ;;  %v3048_v43 = vld [vmem:[%s3421_s4 + $0x28] sm:$0xff] }
 0x4b2   :  { %2462 = vmatmul.mubr.msk.bf16.vlgmr.msra.gmra.mxu1 %vm351_vm4, %v400_v39 }
 0x4b3   :  { %2466 = vmatpush3.bf16.xpose.msra.mxu1 %v458_v42  ;;  %2467 = vmatprep.mubr.msk.bf16.mxu1 %vm2792_vm2, %v2791_v15 }
 0x4b4   :  { %2471 = vmatprep.subr.bf16.mxu1 %v2791_v15 }
 0x4ba   :  { %2468 = vmatmul.mubr.msk.bf16.vlgmr.msra.gmra.mxu1 %vm351_vm4, %v451_v44  ;;  %v3053_v44 = vld [vmem:[%s3421_s4 + $0x30] sm:$0xff] }
 0x4bb   :  { %2472 = vmatpush3.bf16.xpose.msra.mxu1 %v509_v45  ;;  %2473 = vmatprep.mubr.msk.bf16.mxu1 %vm2792_vm2, %v2791_v15 }
 0x4bc   :  { %2477 = vmatprep.subr.bf16.mxu1 %v2791_v15 }
 0x4c2   :  { %2474 = vmatmul.mubr.msk.bf16.vlgmr.msra.gmra.mxu1 %vm351_vm4, %v502_v46 }
 0x4c3   :  { %2479 = vmatprep.mubr.msk.bf16.mxu1 %vm2792_vm2, %v2791_v15 }
 0x56a   :  { %v392_v48 = vpop.f32.mrf.mxu1 }
 0x56b   :  { %v552_v49 = vadd.f32 %v392_v48, %v3006_v47 }
 0x56c   :  { %v2457_v51 = vpop.f32.mrf.mxu1 }
 0x56d   :  { %v561_v53 = vsel %vm560_vm5, %v552_v49, -inf }
 0x56e   :  { %562 = vmax.xlane.f32.xlu1 %v561_v53  ;;  %v395_v55 = vpop.f32.mrf.mxu1 }
 0x56f   :  { %v553_v56 = vadd.f32 %v395_v55, %v3012_v52 }
 0x570   :  { %v2458_v57 = vpop.f32.mrf.mxu1 }
 0x571   :  { %v564_v59 = vsel %vm560_vm5, %v553_v56, -inf }
 0x572   :  { %565 = vmax.xlane.f32.xlu0 %v564_v59  ;;  %v443_v60 = vpop.f32.mrf.mxu1 }
 0x573   :  { %v554_v61 = vadd.f32 %v443_v60, %v3019_v58 }
 0x574   :  { %v2463_v62 = vpop.f32.mrf.mxu1 }
 0x575   :  { %v567_v0 = vsel %vm560_vm5, %v554_v61, -inf }
 0x576   :  { %568 = vmax.xlane.f32.xlu0 %v567_v0  ;;  %v446_v1 = vpop.f32.mrf.mxu1 }
 0x577   :  { %v555_v2 = vadd.f32 %v446_v1, %v3026_v63 }
 0x578   :  { %v2464_v3 = vpop.f32.mrf.mxu1 }
 0x579   :  { %v570_v4 = vsel %vm560_vm5, %v555_v2, -inf }
 0x57a   :  { %571 = vmax.xlane.f32.xlu0 %v570_v4  ;;  %v494_v5 = vpop.f32.mrf.mxu1 }
 0x57b   :  { %v556_v42 = vadd.f32 %v494_v5, %v3042_v41 }
 0x57c   :  { %v2469_v6 = vpop.f32.mrf.mxu1 }
 0x57d   :  { %v573_v48 = vsel %vm560_vm5, %v556_v42, -inf }
 0x57e   :  { %v497_v7 = vpop.f32.mrf.mxu1 }
 0x57f   :  { %v557_v45 = vadd.f32 %v497_v7, %v3048_v43 }
 0x580   :  { %v2470_v8 = vpop.f32.mrf.mxu1 }
 0x581   :  { %v576_v53 = vsel %vm560_vm5, %v557_v45, -inf }
 0x582   :  { %v545_v9 = vpop.f32.mrf.mxu1 }
 0x583   :  { %v558_v46 = vadd.f32 %v545_v9, %v3053_v44 }
 0x584   :  { %v2475_v13 = vpop.f32.mrf.mxu1 }
 0x585   :  { %v579_v55 = vsel %vm560_vm5, %v558_v46, -inf }
 0x586   :  { %v548_v14 = vpop.f32.mrf.mxu1 }
 0x588   :  { %v2476_v17 = vpop.f32.mrf.mxu1 }
 0x5f7   :  { %v563_v19 = vpop.xlane.xlu1 %562 }
 0x5f8   :  { %v585_v21 = vsub.f32 %v552_v49, %v563_v19  ;;  %v3061_v49 = vld [vmem:[%s3421_s4 + $0x38] sm:$0xff] }
 0x5f9   :  { %v559_v51 = vadd.f32 %v548_v14, %v3061_v49 }
 0x5fa   :  { %v593_v22 = vmul.f32 1.442695, %v585_v21 }
 0x5fb   :  { %v566_v16 = vpop.xlane.xlu0 %565 }
 0x5fc   :  { %2698 = vpow2.f32 %v593_v22  ;;  %v586_v23 = vsub.f32 %v553_v56, %v566_v16  ;;  %v582_v56 = vsel %vm560_vm5, %v559_v51, -inf }
 0x5fe   :  { %v595_v24 = vmul.f32 1.442695, %v586_v23 }
 0x5ff   :  { %v569_v25 = vpop.xlane.xlu0 %568 }
 0x600   :  { %2700 = vpow2.f32 %v595_v24  ;;  %v587_v26 = vsub.f32 %v554_v61, %v569_v25 }
 0x602   :  { %v597_v28 = vmul.f32 1.442695, %v587_v26 }
 0x603   :  { %v572_v29 = vpop.xlane.xlu0 %571 }
 0x604   :  { %2702 = vpow2.f32 %v597_v28  ;;  %v588_v30 = vsub.f32 %v555_v2, %v572_v29 }
 0x606   :  { %v599_v31 = vmul.f32 1.442695, %v588_v30 }
 0x608   :  { %2704 = vpow2.f32 %v599_v31 }
 0x609   :  { %v2699_v32 = vpop.eup %2698 }
 0x60a   :  { %v609_v33 = vsel %vm560_vm5, %v2699_v32, 0.0 }
 0x60b   :  { %610 = vadd.xlane.f32.xlu1 %v609_v33 }
 0x60d   :  { %v2701_v34 = vpop.eup %2700 }
 0x60e   :  { %v612_v36 = vsel %vm560_vm5, %v2701_v34, 0.0 }
 0x60f   :  { %613 = vadd.xlane.f32.xlu0 %v612_v36 }
 0x611   :  { %v2703_v37 = vpop.eup %2702 }
 0x612   :  { %v615_v38 = vsel %vm560_vm5, %v2703_v37, 0.0 }
 0x613   :  { %616 = vadd.xlane.f32.xlu1 %v615_v38 }
 0x615   :  { %v2705_v39 = vpop.eup %2704 }
 0x616   :  { %v618_v40 = vsel %vm560_vm5, %v2705_v39, 0.0 }
 0x617   :  { %619 = vadd.xlane.f32.xlu0 %v618_v40 }
 0x624   :  { %657 = vrot.lane.b32.xlu1 %v2966_v35, %s2800_s1 }
 0x62d   :  { %705 = vrot.lane.b32.xlu0 %v2966_v35, %s2801_s2 }
 0x648   :  { %574 = vmax.xlane.f32.xlu1 %v573_v48 }
 0x64c   :  { %577 = vmax.xlane.f32.xlu0 %v576_v53  ;;  %580 = vmax.xlane.f32.xlu1 %v579_v55 }
 0x650   :  { %583 = vmax.xlane.f32.xlu0 %v582_v56 }
 0x694   :  { %v611_v57 = vpop.xlane.xlu1 %610 }
 0x695   :  { %2706 = vrcp.f32 %v611_v57 }
 0x698   :  { %v614_v59 = vpop.xlane.xlu0 %613 }
 0x699   :  { %2708 = vrcp.f32 %v614_v59 }
 0x69c   :  { %v617_v60 = vpop.xlane.xlu1 %616 }
 0x69d   :  { %2710 = vrcp.f32 %v617_v60 }
 0x6a0   :  { %v658_v61 = vpop.permute.xlu1 %657  ;;  %v620_v62 = vpop.xlane.xlu0 %619 }
 0x6a1   :  { %2712 = vrcp.f32 %v620_v62  ;;  %2478 = vmatpush3.bf16.msra.mxu1 %v658_v61 }
 0x6a2   :  { %2483 = vmatprep.subr.bf16.mxu1 %v2791_v15  ;;  %v2707_v0 = vpop.eup %2706 }
 0x6a3   :  { %v641_v2 = vmul.f32 %v2707_v0, %v2699_v32 }
 0x6a4   :  { %v706_v5 = vpop.permute.xlu0 %705 }
 0x6a6   :  { %v2709_v1 = vpop.eup %2708 }
 0x6a7   :  { %v642_v3 = vmul.f32 %v2709_v1, %v2701_v34 }
 0x6a9   :  { %v649_v4 = vpack.c.bf16 %v642_v3, %v641_v2 }
 0x6aa   :  { %v2711_v6 = vpop.eup %2710 }
 0x6ab   :  { %2480 = vmatmul.mubr.msk.bf16.vlgmr.msra.gmra.mxu1 %vm560_vm5, %v649_v4  ;;  %v643_v8 = vmul.f32 %v2711_v6, %v2703_v37 }
 0x6ac   :  { %2484 = vmatpush3.bf16.msra.mxu1 %v706_v5  ;;  %2485 = vmatprep.mubr.msk.bf16.mxu1 %vm2792_vm2, %v2791_v15 }
 0x6ad   :  { %2489 = vmatprep.subr.bf16.mxu1 %v2791_v15 }
 0x6ae   :  { %v2713_v7 = vpop.eup %2712 }
 0x6af   :  { %v644_v9 = vmul.f32 %v2713_v7, %v2705_v39  ;;  %v653_v39 = vld [vmem:[%s3422_s7] sm:$0xf] }
 0x6b0   :  { %v805_v40 = vsel %vm756_vm6, %v653_v39, 0 }
 0x6b1   :  { %v650_v13 = vpack.c.bf16 %v644_v9, %v643_v8  ;;  %2496 = vmatpush3.bf16.msra.mxu0 %v805_v40 }
 0x6b2   :  { %2507 = vmatprep.subr.bf16.mxu0 %v2791_v15 }
 0x6b3   :  { %2486 = vmatmul.mubr.msk.bf16.vlgmr.msra.gmra.mxu1 %vm560_vm5, %v650_v13 }
 0x6b4   :  { %2491 = vmatprep.mubr.msk.bf16.mxu1 %vm2792_vm2, %v2791_v15 }
 0x6d1   :  { %v575_v14 = vpop.xlane.xlu1 %574 }
 0x6d2   :  { %v589_v17 = vsub.f32 %v556_v42, %v575_v14  ;;  %v654_v42 = vld [vmem:[%s3422_s7 + $0x4] sm:$0xf] }
 0x6d4   :  { %v601_v19 = vmul.f32 1.442695, %v589_v17 }
 0x6d5   :  { %v578_v21 = vpop.xlane.xlu0 %577  ;;  %v581_v22 = vpop.xlane.xlu1 %580 }
 0x6d6   :  { %2714 = vpow2.f32 %v601_v19  ;;  %v590_v16 = vsub.f32 %v557_v45, %v578_v21  ;;  %v591_v23 = vsub.f32 %v558_v46, %v581_v22  ;;  %v758_v45 = vsel %vm756_vm6, %v654_v42, 0  ;;  %v655_v21 = vld [vmem:[%s3422_s7 + $0x8] sm:$0xf] }
 0x6d7   :  { %2490 = vmatpush3.bf16.msra.mxu1 %v758_v45  ;;  %v900_v22 = vsel %vm756_vm6, %v655_v21, 0 }
 0x6d8   :  { %v603_v24 = vmul.f32 1.442695, %v590_v16  ;;  %v605_v25 = vmul.f32 1.442695, %v591_v23  ;;  %2501 = vmatprep.subr.bf16.mxu1 %v2791_v15 }
 0x6d9   :  { %v584_v26 = vpop.xlane.xlu0 %583 }
 0x6da   :  { %2716 = vpow2.f32 %v603_v24  ;;  %v592_v28 = vsub.f32 %v559_v51, %v584_v26 }
 0x6db   :  { %2718 = vpow2.f32 %v605_v25 }
 0x6dc   :  { %v607_v29 = vmul.f32 1.442695, %v592_v28 }
 0x6de   :  { %2720 = vpow2.f32 %v607_v29 }
 0x6e3   :  { %v2715_v30 = vpop.eup %2714 }
 0x6e4   :  { %v621_v31 = vsel %vm560_vm5, %v2715_v30, 0.0 }
 0x6e5   :  { %622 = vadd.xlane.f32.xlu1 %v621_v31 }
 0x6e7   :  { %v2717_v32 = vpop.eup %2716 }
 0x6e8   :  { %v2719_v33 = vpop.eup %2718  ;;  %v624_v34 = vsel %vm560_vm5, %v2717_v32, 0.0 }
 0x6e9   :  { %v627_v36 = vsel %vm560_vm5, %v2719_v33, 0.0  ;;  %625 = vadd.xlane.f32.xlu0 %v624_v34 }
 0x6ea   :  { %628 = vadd.xlane.f32.xlu1 %v627_v36  ;;  %v656_v36 = vld [vmem:[%s3422_s7 + $0xc] sm:$0xf] }
 0x6eb   :  { %v2721_v37 = vpop.eup %2720  ;;  %v997_v39 = vsel %vm756_vm6, %v656_v36, 0 }
 0x6ec   :  { %v630_v38 = vsel %vm560_vm5, %v2721_v37, 0.0 }
 0x6ed   :  { %631 = vadd.xlane.f32.xlu0 %v630_v38 }
 0x6fb   :  { %848 = vrot.lane.b32.xlu1 %v2966_v35, %s2802_s20 }
 0x703   :  { %945 = vrot.lane.b32.xlu0 %v2966_v35, %s2803_s21 }
 0x76b   :  { %v697_v46 = vpop.f32.mrf.mxu1 }
 0x76d   :  { %v2481_v48 = vpop.f32.mrf.mxu1 }
 0x76e   :  { %v623_v51 = vpop.xlane.xlu1 %622 }
 0x76f   :  { %v700_v53 = vpop.f32.mrf.mxu1  ;;  %2722 = vrcp.f32 %v623_v51 }
 0x770   :  { %v704_v55 = vpack.c.bf16 %v700_v53, %v697_v46 }
 0x771   :  { %v2482_v56 = vpop.f32.mrf.mxu1 }
 0x772   :  { %v626_v57 = vpop.xlane.xlu0 %625  ;;  %2498 = vmatmul.mubr.msk.bf16.vlgmr.msra.gmra.mxu0 %vm351_vm4, %v704_v55 }
 0x773   :  { %2724 = vrcp.f32 %v626_v57  ;;  %v745_v59 = vpop.f32.mrf.mxu1  ;;  %2509 = vmatprep.mubr.msk.bf16.mxu0 %vm2792_vm2, %v2791_v15  ;;  %v629_v60 = vpop.xlane.xlu1 %628  ;;  %2508 = vmatpush3.bf16.msra.mxu0 %v900_v22  ;;  %v1046_v57 = vsub.s32 3, %v2944_v10 }
 0x774   :  { %2519 = vmatprep.subr.bf16.mxu0 %v2791_v15 }
 0x775   :  { %v2487_v61 = vpop.f32.mrf.mxu1 }
 0x776   :  { %v632_v62 = vpop.xlane.xlu0 %631 }
 0x777   :  { %2726 = vrcp.f32 %v632_v62  ;;  %v748_v35 = vpop.f32.mrf.mxu1  ;;  %v849_v2 = vpop.permute.xlu1 %848 }
 0x778   :  { %v752_v0 = vpack.c.bf16 %v748_v35, %v745_v59  ;;  %2728 = vrcp.f32 %v629_v60  ;;  %v1047_v35 = vrot.slane %v2950_v12, %v1046_v57 }
 0x779   :  { %v2488_v1 = vpop.f32.mrf.mxu1 }
 0x77a   :  { %2492 = vmatmul.mubr.msk.bf16.vlgmr.msra.gmra.mxu1 %vm351_vm4, %v752_v0  ;;  %v946_v9 = vpop.permute.xlu0 %945 }
 0x77b   :  { %2502 = vmatpush3.bf16.msra.mxu1 %v849_v2  ;;  %2503 = vmatprep.mubr.msk.bf16.mxu1 %vm2792_vm2, %v2791_v15 }
 0x77c   :  { %2513 = vmatprep.subr.bf16.mxu1 %v2791_v15  ;;  %v2723_v3 = vpop.eup %2722 }
 0x77d   :  { %v645_v5 = vmul.f32 %v2723_v3, %v2715_v30 }
 0x780   :  { %v2725_v4 = vpop.eup %2724 }
 0x781   :  { %v646_v6 = vmul.f32 %v2725_v4, %v2717_v32 }
 0x783   :  { %v651_v7 = vpack.c.bf16 %v646_v6, %v645_v5 }
 0x784   :  { %v2727_v8 = vpop.eup %2726 }
 0x785   :  { %2504 = vmatmul.mubr.msk.bf16.vlgmr.msra.gmra.mxu1 %vm560_vm5, %v651_v7  ;;  %v2729_v13 = vpop.eup %2728  ;;  %v648_v14 = vmul.f32 %v2727_v8, %v2721_v37 }
 0x786   :  { %2514 = vmatpush3.bf16.msra.mxu1 %v946_v9  ;;  %2515 = vmatprep.mubr.msk.bf16.mxu1 %vm2792_vm2, %v2791_v15  ;;  %v647_v17 = vmul.f32 %v2729_v13, %v2719_v33 }
 0x787   :  { %2525 = vmatprep.subr.bf16.mxu1 %v2791_v15 }
 0x788   :  { %v652_v19 = vpack.c.bf16 %v648_v14, %v647_v17 }
 0x78d   :  { %2516 = vmatmul.mubr.msk.bf16.vlgmr.msra.gmra.mxu1 %vm560_vm5, %v652_v19 }
 0x78e   :  { %2529 = vmatprep.mubr.msk.bf16.mxu1 %vm2792_vm2, %v2791_v15 }
 0x832   :  { %v841_v16 = vpop.f32.mrf.mxu0 }
 0x834   :  { %v2499_v23 = vpop.f32.mrf.mxu0 }
 0x836   :  { %v844_v24 = vpop.f32.mrf.mxu0 }
 0x838   :  { %v2500_v25 = vpop.f32.mrf.mxu0 }
 0x839   :  { %v2676_v25 = vld [vmem:[%s3423_s8 + $0x8] sm:$0xff]  }
 0x83a   :  { %v794_v26 = vpop.f32.mrf.mxu1  ;;  %2526 = vmatpush3.bf16.msra.mxu1 %v2676_v25  ;;  %v1180_v25 = vsub.s32 7, %v2944_v10 }
 0x83b   :  { %v842_v28 = vadd.f32 %v841_v16, %v794_v26  ;;  %v2677_v26 = vld [vmem:[%s3423_s8] sm:$0xff]   ;;  %2527 = vmatprep.subr.bf16.mxu1 %v2791_v15 }
 0x83c   :  { %v2493_v29 = vpop.f32.mrf.mxu1 }
 0x83e   :  { %v797_v30 = vpop.f32.mrf.mxu1  ;;  %2528 = vmatpush3.bf16.msra.mxu1 %v2677_v26  ;;  %v1181_v26 = vrot.slane %v2950_v12, %v1180_v25 }
 0x83f   :  { %v845_v31 = vadd.f32 %v844_v24, %v797_v30  ;;  %2545 = vmatprep.subr.bf16.mxu1 %v2791_v15 }
 0x840   :  { %v2494_v32 = vpop.f32.mrf.mxu1 }
 0x845   :  { %v888_v33 = vpop.f32.mrf.mxu1 }
 0x847   :  { %v2505_v34 = vpop.f32.mrf.mxu1 }
 0x848   :  { %v1078_v34 = vsub.s32 4, %v2944_v10 }
 0x849   :  { %v891_v37 = vpop.f32.mrf.mxu1 }
 0x84a   :  { %v895_v38 = vpack.c.bf16 %v891_v37, %v888_v33 }
 0x84b   :  { %v2506_v40 = vpop.f32.mrf.mxu1 }
 0x84c   :  { %2510 = vmatmul.mubr.msk.bf16.vlgmr.msra.gmra.mxu0 %vm351_vm4, %v895_v38  ;;  %v1079_v38 = vrot.slane %v2950_v12, %v1078_v34 }
 0x84d   :  { %v985_v42 = vpop.f32.mrf.mxu1  ;;  %2520 = vmatpush3.bf16.msra.mxu0 %v997_v39  ;;  %2521 = vmatprep.mubr.msk.bf16.mxu0 %vm2792_vm2, %v2791_v15  ;;  %v1084_v39 = vsub.s32 5, %v2944_v10 }
 0x84e   :  { %2533 = vmatprep.subr.bf16.mxu0 %v2791_v15 }
 0x84f   :  { %v2517_v45 = vpop.f32.mrf.mxu1 }
 0x851   :  { %v988_v46 = vpop.f32.mrf.mxu1 }
 0x852   :  { %v992_v48 = vpack.c.bf16 %v988_v46, %v985_v42  ;;  %v1085_v46 = vrot.slane %v2950_v12, %v1084_v39 }
 0x853   :  { %v2518_v51 = vpop.f32.mrf.mxu1 }
 0x854   :  { %2522 = vmatmul.mubr.msk.bf16.vlgmr.msra.gmra.mxu0 %vm351_vm4, %v992_v48 }
 0x855   :  { %2541 = vmatprep.mubr.msk.bf16.mxu0 %vm2792_vm2, %v2791_v15 }
 0x90c   :  { %v936_v53 = vpop.f32.mrf.mxu0 }
 0x90d   :  { %v943_v60 = vadd.f32 %v936_v53, %v842_v28 }
 0x90e   :  { %v2511_v55 = vpop.f32.mrf.mxu0 }
 0x910   :  { %v939_v56 = vpop.f32.mrf.mxu0 }
 0x911   :  { %v944_v1 = vadd.f32 %v939_v56, %v845_v31  ;;  %v2678_v56 = vld [vmem:[%s3424_s9 + $0x18] sm:$0xff]  }
 0x912   :  { %v2512_v59 = vpop.f32.mrf.mxu0  ;;  %2534 = vmatpush3.bf16.msra.mxu0 %v2678_v56 }
 0x913   :  { %2535 = vmatprep.subr.bf16.mxu0 %v2791_v15  ;;  %v2679_v59 = vld [vmem:[%s3424_s9 + $0x10] sm:$0xff]  }
 0x914   :  { %v1033_v61 = vpop.f32.mrf.mxu0 }
 0x915   :  { %v1040_v62 = vadd.f32 %v1033_v61, %v943_v60  ;;  %v2680_v60 = vld [vmem:[%s3424_s9 + $0x8] sm:$0xff]   ;;  %v2681_v61 = vld [vmem:[%s3424_s9] sm:$0xff]  }
 0x916   :  { %v2523_v0 = vpop.f32.mrf.mxu0  ;;  %2536 = vmatpush3.bf16.msra.mxu0 %v2679_v59  ;;  %v2683_v59 = vld [vmem:[%s3419_s6 + $0x10] sm:$0xff]  }
 0x917   :  { %v1042_v2 = vadd.f32 %v1040_v62, %v2921_v50  ;;  %2537 = vmatprep.subr.bf16.mxu0 %v2791_v15  ;;  %v1095_v62 = vsub.s32 6, %v2944_v10 }
 0x918   :  { %v1036_v3 = vpop.f32.mrf.mxu0 }
 0x919   :  { %v1041_v4 = vadd.f32 %v1036_v3, %v944_v1  ;;  %v3128_v5 = vadd.f32 %v1047_v35, %v1042_v2 }
 0x91a   :  { %v2524_v6 = vpop.f32.mrf.mxu0  ;;  %2538 = vmatpush3.bf16.msra.mxu0 %v2680_v60 }
 0x91b   :  { %v1043_v7 = vadd.f32 %v1041_v4, %v2925_v54  ;;  %v1050_v8 = vmul.f32 %v2909_v20, %v3128_v5  ;;  %2539 = vmatprep.subr.bf16.mxu0 %v2791_v15 }
 0x91d   :  { %1052 = vadd.xlane.f32.xlu1 %v1050_v8  ;;  %v3133_v9 = vadd.f32 %v1047_v35, %v1043_v7  ;;  %v1096_v35 = vrot.slane %v2950_v12, %v1095_v62 }
 0x91e   :  { %2540 = vmatpush3.bf16.msra.mxu0 %v2681_v61 }
 0x91f   :  { %v1051_v13 = vmul.f32 %v2909_v20, %v3133_v9  ;;  %2559 = vmatprep.subr.bf16.mxu0 %v2791_v15 }
 0x921   :  { %1054 = vadd.xlane.f32.xlu0 %v1051_v13 }
 0x9a6   :  { %v1053_v14 = vpop.xlane.xlu1 %1052 }
 0x9a7   :  { %v1056_v17 = vmul.f32 0.03125, %v1053_v14 }
 0x9a9   :  { %v1058_v50 = vsub.f32 %v1050_v8, %v1056_v17 }
 0x9aa   :  { %v1055_v19 = vpop.xlane.xlu0 %1054 }
 0x9ab   :  { %v1057_v21 = vmul.f32 0.03125, %v1055_v19  ;;  %v1060_v22 = vmul.f32 %v2909_v20, %v1058_v50 }
 0x9ad   :  { %v1059_v16 = vsub.f32 %v1051_v13, %v1057_v21  ;;  %v1062_v23 = vmul.f32 %v1060_v22, %v1060_v22 }
 0x9af   :  { %1064 = vadd.xlane.f32.xlu1 %v1062_v23  ;;  %v1061_v54 = vmul.f32 %v2909_v20, %v1059_v16 }
 0x9b1   :  { %v1063_v24 = vmul.f32 %v1061_v54, %v1061_v54 }
 0x9b3   :  { %1066 = vadd.xlane.f32.xlu0 %v1063_v24 }
 0xa38   :  { %v1065_v28 = vpop.xlane.xlu1 %1064 }
 0xa39   :  { %v1068_v29 = vmul.f32 0.03125, %v1065_v28 }
 0xa3b   :  { %v1070_v30 = vadd.f32 1e-05, %v1068_v29 }
 0xa3c   :  { %v1067_v31 = vpop.xlane.xlu0 %1066 }
 0xa3d   :  { %2730 = vrsqrt.f32 %v1070_v30  ;;  %v1069_v32 = vmul.f32 0.03125, %v1067_v31 }
 0xa3f   :  { %v1071_v33 = vadd.f32 1e-05, %v1069_v32 }
 0xa41   :  { %2732 = vrsqrt.f32 %v1071_v33 }
 0xa4a   :  { %v2731_v36 = vpop.eup %2730 }
 0xa4b   :  { %v1074_v37 = vmul.f32 %v2731_v36, %v1060_v22 }
 0xa4d   :  { %v1080_v45 = vmul.f32 %v1079_v38, %v1074_v37 }
 0xa4e   :  { %v2733_v40 = vpop.eup %2732 }
 0xa4f   :  { %v1075_v42 = vmul.f32 %v2733_v40, %v1061_v54  ;;  %v1086_v51 = vadd.f32 %v1085_v46, %v1080_v45 }
 0xa51   :  { %v1081_v48 = vmul.f32 %v1079_v38, %v1075_v42 }
 0xa53   :  { %v1087_v53 = vadd.f32 %v1085_v46, %v1081_v48 }
 0xa55   :  { %v1088_v55 = vpack.c.bf16 %v1087_v53, %v1086_v51 }
 0xa57   :  { %2530 = vmatmul.mubr.msk.bf16.vlgmr.msra.gmra.mxu1 %vm302_vm3, %v1088_v55 }
 0xa58   :  { %2549 = vmatprep.mubr.msk.bf16.mxu1 %vm2792_vm2, %v2791_v15 }
 0xb17   :  { %v1146_v0 = vpop.f32.mrf.mxu1 }
 0xb18   :  { %v1147_v1 = vadd.f32 %v1146_v0, %v1096_v35 }
 0xb19   :  { %v2531_v2 = vpop.f32.mrf.mxu1 }
 0xb1a   :  { %v2313_v3 = vmul.f32 -1.702, %v1147_v1 }
 0xb1b   :  { %v1149_v4 = vpop.f32.mrf.mxu1 }
 0xb1c   :  { %v1157_v6 = vmul.f32 1.442695, %v2313_v3  ;;  %v1150_v7 = vadd.f32 %v1149_v4, %v1096_v35  ;;  %v3208_v3 = vld [vmem:[%s3420_s5 + $0x8] sm:$0xff] }
 0xb1d   :  { %v2532_v8 = vpop.f32.mrf.mxu1  ;;  %v1283_v4 = vrot.slane %v3208_v3, %v271_v11  ;;  %v1301_v11 = vrot.slane %v3208_v3, %v288_v27 }
 0xb1e   :  { %2734 = vpow2.f32 %v1157_v6  ;;  %v2314_v13 = vmul.f32 -1.702, %v1150_v7 }
 0xb20   :  { %v1159_v14 = vmul.f32 1.442695, %v2314_v13 }
 0xb22   :  { %2736 = vpow2.f32 %v1159_v14 }
 0xb2b   :  { %v2735_v17 = vpop.eup %2734 }
 0xb2c   :  { %v1161_v50 = vadd.f32 1.0, %v2735_v17 }
 0xb2e   :  { %2738 = vrcp.f32 %v1161_v50 }
 0xb2f   :  { %v2737_v19 = vpop.eup %2736 }
 0xb30   :  { %v1162_v21 = vadd.f32 1.0, %v2737_v19 }
 0xb32   :  { %2740 = vrcp.f32 %v1162_v21 }
 0xb3b   :  { %v2739_v22 = vpop.eup %2738 }
 0xb3c   :  { %v1167_v23 = vmul.f32 %v2739_v22, %v1147_v1 }
 0xb3f   :  { %v2741_v16 = vpop.eup %2740 }
 0xb40   :  { %v1168_v54 = vmul.f32 %v2741_v16, %v1150_v7  ;;  %v1289_v7 = vrot.slane %v3208_v3, %v277_v18 }
 0xb42   :  { %v1169_v24 = vpack.c.bf16 %v1168_v54, %v1167_v23 }
 0xb44   :  { %2542 = vmatmul.mubr.msk.bf16.vlgmr.msra.gmra.mxu0 %vm157_vm0, %v1169_v24 }
 0xb45   :  { %2561 = vmatprep.mubr.msk.bf16.mxu0 %vm2792_vm2, %v2791_v15 }
 0xc04   :  { %v1243_v28 = vpop.f32.mrf.mxu0 }
 0xc05   :  { %v1244_v29 = vadd.f32 %v1243_v28, %v1181_v26 }
 0xc06   :  { %v2543_v30 = vpop.f32.mrf.mxu0 }
 0xc07   :  { %v3186_v31 = vadd.f32 %v1244_v29, %v3128_v5 }
 0xc08   :  { %v1246_v32 = vpop.f32.mrf.mxu0 }
 0xc09   :  { %v1247_v33 = vadd.f32 %v1246_v32, %v1181_v26  ;;  %v1254_v36 = vmul.f32 %v2909_v20, %v3186_v31 }
 0xc0a   :  { %v2544_v37 = vpop.f32.mrf.mxu0 }
 0xc0b   :  { %v3191_v38 = vadd.f32 %v1247_v33, %v3133_v9  ;;  %1256 = vadd.xlane.f32.xlu1 %v1254_v36  ;;  %v2682_v9 = vld [vmem:[%s3419_s6 + $0x18] sm:$0xff]  }
 0xc0c   :  { %2546 = vmatpush3.bf16.msra.mxu1 %v2682_v9 }
 0xc0d   :  { %v1255_v40 = vmul.f32 %v2909_v20, %v3191_v38  ;;  %2547 = vmatprep.subr.bf16.mxu1 %v2791_v15 }
 0xc0f   :  { %1258 = vadd.xlane.f32.xlu0 %v1255_v40 }
 0xc10   :  { %2548 = vmatpush3.bf16.msra.mxu1 %v2683_v59 }
 0xc11   :  { %2553 = vmatprep.subr.bf16.mxu1 %v2791_v15 }
 0xc94   :  { %v1257_v12 = vpop.xlane.xlu1 %1256 }
 0xc95   :  { %v1260_v42 = vmul.f32 0.03125, %v1257_v12 }
 0xc97   :  { %v1262_v45 = vsub.f32 %v1254_v36, %v1260_v42 }
 0xc98   :  { %v1259_v46 = vpop.xlane.xlu0 %1258 }
 0xc99   :  { %v1261_v5 = vmul.f32 0.03125, %v1259_v46  ;;  %v1264_v48 = vmul.f32 %v2909_v20, %v1262_v45 }
 0xc9b   :  { %v1263_v51 = vsub.f32 %v1255_v40, %v1261_v5  ;;  %v1266_v53 = vmul.f32 %v1264_v48, %v1264_v48 }
 0xc9d   :  { %1268 = vadd.xlane.f32.xlu1 %v1266_v53  ;;  %v1265_v55 = vmul.f32 %v2909_v20, %v1263_v51 }
 0xc9f   :  { %v1267_v56 = vmul.f32 %v1265_v55, %v1265_v55 }
 0xca1   :  { %1270 = vadd.xlane.f32.xlu0 %v1267_v56 }
 0xd26   :  { %v1269_v60 = vpop.xlane.xlu1 %1268 }
 0xd27   :  { %v1272_v61 = vmul.f32 0.03125, %v1269_v60 }
 0xd29   :  { %v1274_v35 = vadd.f32 1e-05, %v1272_v61 }
 0xd2a   :  { %v1271_v0 = vpop.xlane.xlu0 %1270 }
 0xd2b   :  { %2742 = vrsqrt.f32 %v1274_v35  ;;  %v1273_v1 = vmul.f32 0.03125, %v1271_v0 }
 0xd2d   :  { %v1275_v2 = vadd.f32 1e-05, %v1273_v1 }
 0xd2f   :  { %2744 = vrsqrt.f32 %v1275_v2 }
 0xd38   :  { %v2743_v6 = vpop.eup %2742 }
 0xd39   :  { %v1278_v8 = vmul.f32 %v2743_v6, %v1264_v48 }
 0xd3b   :  { %v1284_v13 = vmul.f32 %v1283_v4, %v1278_v8 }
 0xd3c   :  { %v2745_v14 = vpop.eup %2744 }
 0xd3d   :  { %v1279_v17 = vmul.f32 %v2745_v14, %v1265_v55  ;;  %v1290_v50 = vadd.f32 %v1289_v7, %v1284_v13 }
 0xd3f   :  { %v1285_v19 = vmul.f32 %v1283_v4, %v1279_v17 }
 0xd41   :  { %v1291_v21 = vadd.f32 %v1289_v7, %v1285_v19 }
 0xd43   :  { %v1292_v22 = vpack.c.bf16 %v1291_v21, %v1290_v50 }
 0xd45   :  { %2550 = vmatmul.mubr.msk.bf16.vlgmr.msra.gmra.mxu1 %vm302_vm3, %v1292_v22 }
 0xd46   :  { %2555 = vmatprep.mubr.msk.bf16.mxu1 %vm2792_vm2, %v2791_v15 }
 0xe05   :  { %v1351_v16 = vpop.f32.mrf.mxu1 }
 0xe06   :  { %v1352_v54 = vadd.f32 %v1351_v16, %v1301_v11 }
 0xe07   :  { %v2551_v23 = vpop.f32.mrf.mxu1 }
 0xe09   :  { %v1354_v18 = vpop.f32.mrf.mxu1 }
 0xe0a   :  { %v1355_v24 = vadd.f32 %v1354_v18, %v1301_v11 }
 0xe0b   :  { %v2552_v26 = vpop.f32.mrf.mxu1 }
 0xe0c   :  { %v3222_v28 = vpack.c.bf16 %v1355_v24, %v1352_v54 }
 0xe0e   :  { %1409 = vrot.lane.b32.xlu0 %v3222_v28, %s2795_s11  ;;  %1411 = vrot.lane.b32.xlu1 %v3222_v28, %s2793_s29 }
 0xe12   :  { %1513 = vrot.lane.b32.xlu0 %v3222_v28, %s2799_s15  ;;  %1360 = vrot.lane.b32.xlu1 %v3222_v28, %s2794_s30 }
 0xe16   :  { %1462 = vrot.lane.b32.xlu1 %v3222_v28, %s2797_s13 }
 0xe1a   :  { %1460 = vrot.lane.b32.xlu1 %v3222_v28, %s2796_s12 }
 0xe1e   :  { %1511 = vrot.lane.b32.xlu1 %v3222_v28, %s2798_s14 }
 0xe80   :  { %v1410_v27 = vpop.permute.xlu0 %1409  ;;  %v1412_v29 = vpop.permute.xlu1 %1411 }
 0xe81   :  { %v1417_v30 = vsel %vm351_vm4, %v1412_v29, 0 }
 0xe82   :  { %2560 = vmatpush3.bf16.xpose.msra.mxu0 %v1417_v30 }
 0xe83   :  { %2571 = vmatprep.subr.bf16.mxu0 %v2791_v15 }
 0xe84   :  { %v1361_v32 = vpop.permute.xlu1 %1360  ;;  %v1514_v36 = vpop.permute.xlu0 %1513 }
 0xe85   :  { %v1366_v33 = vsel %vm351_vm4, %v1361_v32, 0  ;;  %v1519_v40 = vsel %vm351_vm4, %v1514_v36, 0 }
 0xe86   :  { %2554 = vmatpush3.bf16.xpose.msra.mxu1 %v1366_v33 }
 0xe87   :  { %2565 = vmatprep.subr.bf16.mxu1 %v2791_v15 }
 0xe88   :  { %v1463_v37 = vpop.permute.xlu1 %1462 }
 0xe89   :  { %2562 = vmatmul.mubr.msk.bf16.vlgmr.msra.gmra.mxu0 %vm351_vm4, %v1410_v27  ;;  %v1468_v42 = vsel %vm351_vm4, %v1463_v37, 0 }
 0xe8a   :  { %2572 = vmatpush3.bf16.xpose.msra.mxu0 %v1519_v40  ;;  %2573 = vmatprep.mubr.msk.bf16.mxu0 %vm2792_vm2, %v2791_v15 }
 0xe8b   :  { %2583 = vmatprep.subr.bf16.mxu0 %v2791_v15 }
 0xe8c   :  { %v1461_v12 = vpop.permute.xlu1 %1460 }
 0xe8d   :  { %2556 = vmatmul.mubr.msk.bf16.vlgmr.msra.gmra.mxu1 %vm351_vm4, %v3222_v28 }
 0xe8e   :  { %2566 = vmatpush3.bf16.xpose.msra.mxu1 %v1468_v42  ;;  %2567 = vmatprep.mubr.msk.bf16.mxu1 %vm2792_vm2, %v2791_v15 }
 0xe8f   :  { %2577 = vmatprep.subr.bf16.mxu1 %v2791_v15 }
 0xe90   :  { %v1512_v45 = vpop.permute.xlu1 %1511 }
 0xe91   :  { %2574 = vmatmul.mubr.msk.bf16.vlgmr.msra.gmra.mxu0 %vm351_vm4, %v1512_v45 }
 0xe92   :  { %2585 = vmatprep.mubr.msk.bf16.mxu0 %vm2792_vm2, %v2791_v15 }
 0xe95   :  { %2568 = vmatmul.mubr.msk.bf16.vlgmr.msra.gmra.mxu1 %vm351_vm4, %v1461_v12 }
 0xe96   :  { %2579 = vmatprep.mubr.msk.bf16.mxu1 %vm2792_vm2, %v2791_v15 }
 0xf49   :  { %v1453_v46 = vpop.f32.mrf.mxu0 }
 0xf4a   :  { %v1564_v5 = vadd.f32 %v1453_v46, %v3019_v58 }
 0xf4b   :  { %v2563_v48 = vpop.f32.mrf.mxu0 }
 0xf4c   :  { %v1576_v51 = vsel %vm560_vm5, %v1564_v5, -inf }
 0xf4d   :  { %1577 = vmax.xlane.f32.xlu0 %v1576_v51  ;;  %v1402_v53 = vpop.f32.mrf.mxu1  ;;  %v1456_v55 = vpop.f32.mrf.mxu0 }
 0xf4e   :  { %v1565_v56 = vadd.f32 %v1456_v55, %v3026_v63  ;;  %v3263_v60 = vadd.f32 %v1402_v53, %v3006_v47 }
 0xf4f   :  { %v2557_v9 = vpop.f32.mrf.mxu1  ;;  %v2564_v59 = vpop.f32.mrf.mxu0 }
 0xf50   :  { %v1579_v61 = vsel %vm560_vm5, %v1565_v56, -inf  ;;  %v1570_v4 = vsel %vm560_vm5, %v3263_v60, -inf }
 0xf51   :  { %1580 = vmax.xlane.f32.xlu1 %v1579_v61  ;;  %v1405_v35 = vpop.f32.mrf.mxu1  ;;  %v1555_v0 = vpop.f32.mrf.mxu0 }
 0xf52   :  { %v1563_v2 = vadd.f32 %v1405_v35, %v3012_v52  ;;  %v1568_v52 = vadd.f32 %v1555_v0, %v3053_v44 }
 0xf53   :  { %v2558_v1 = vpop.f32.mrf.mxu1  ;;  %v2575_v58 = vpop.f32.mrf.mxu0 }
 0xf54   :  { %v1573_v13 = vsel %vm560_vm5, %v1563_v2, -inf  ;;  %v1588_v16 = vsel %vm560_vm5, %v1568_v52, -inf }
 0xf55   :  { %v1558_v6 = vpop.f32.mrf.mxu0  ;;  %1571 = vmax.xlane.f32.xlu1 %v1570_v4  ;;  %v1504_v63 = vpop.f32.mrf.mxu1 }
 0xf56   :  { %v1566_v47 = vadd.f32 %v1504_v63, %v3042_v41  ;;  %v1569_v22 = vadd.f32 %v1558_v6, %v3061_v49 }
 0xf57   :  { %v2569_v7 = vpop.f32.mrf.mxu1  ;;  %v2576_v8 = vpop.f32.mrf.mxu0 }
 0xf58   :  { %v1582_v19 = vsel %vm560_vm5, %v1566_v47, -inf  ;;  %v1591_v41 = vsel %vm560_vm5, %v1569_v22, -inf }
 0xf59   :  { %1574 = vmax.xlane.f32.xlu1 %v1573_v13  ;;  %v1507_v14 = vpop.f32.mrf.mxu1 }
 0xf5a   :  { %v1567_v50 = vadd.f32 %v1507_v14, %v3048_v43 }
 0xf5b   :  { %v2570_v17 = vpop.f32.mrf.mxu1 }
 0xf5c   :  { %v1585_v21 = vsel %vm560_vm5, %v1567_v50, -inf }
 0xf5d   :  { %1583 = vmax.xlane.f32.xlu1 %v1582_v19 }
 0xf61   :  { %1586 = vmax.xlane.f32.xlu1 %v1585_v21 }
 0xf65   :  { %1589 = vmax.xlane.f32.xlu1 %v1588_v16 }
 0xf69   :  { %1592 = vmax.xlane.f32.xlu1 %v1591_v41 }
 0xf7a   :  { %1667 = vrot.lane.b32.xlu1 %v3222_v28, %s2800_s1 }
 0xfd6   :  { %v1578_v43 = vpop.xlane.xlu0 %1577 }
 0xfd7   :  { %v1596_v11 = vsub.f32 %v1564_v5, %v1578_v43 }
 0xfd9   :  { %v1606_v23 = vmul.f32 1.442695, %v1596_v11 }
 0xfda   :  { %v1581_v18 = vpop.xlane.xlu1 %1580 }
 0xfdb   :  { %2746 = vpow2.f32 %v1606_v23  ;;  %v1597_v44 = vsub.f32 %v1565_v56, %v1581_v18  ;;  %v2333_v18 = vld [vmem:[%s3422_s7 + $0x14] sm:$0xf] }
 0xfdd   :  { %v1608_v54 = vmul.f32 1.442695, %v1597_v44  ;;  %v1767_v44 = vsel %vm756_vm6, %v2333_v18, 0 }
 0xfde   :  { %v1572_v24 = vpop.xlane.xlu1 %1571 }
 0xfdf   :  { %2748 = vpow2.f32 %v1608_v54  ;;  %v1594_v63 = vsub.f32 %v3263_v60, %v1572_v24  ;;  %v2332_v54 = vld [vmem:[%s3422_s7 + $0x10] sm:$0xf] }
 0xfe0   :  { %v1814_v24 = vsel %vm756_vm6, %v2332_v54, 0 }
 0xfe1   :  { %v1602_v7 = vmul.f32 1.442695, %v1594_v63 }
 0xfe2   :  { %v1575_v26 = vpop.xlane.xlu1 %1574 }
 0xfe3   :  { %v1595_v49 = vsub.f32 %v1563_v2, %v1575_v26 }
 0xfe5   :  { %v1604_v27 = vmul.f32 1.442695, %v1595_v49 }
 0xfe6   :  { %v1584_v29 = vpop.xlane.xlu1 %1583 }
 0xfe7   :  { %2750 = vpow2.f32 %v1604_v27  ;;  %v1598_v30 = vsub.f32 %v1566_v47, %v1584_v29 }
 0xfe8   :  { %v2747_v32 = vpop.eup %2746 }
 0xfe9   :  { %v1610_v33 = vmul.f32 1.442695, %v1598_v30  ;;  %v1624_v36 = vsel %vm560_vm5, %v2747_v32, 0.0 }
 0xfea   :  { %1625 = vadd.xlane.f32.xlu0 %v1624_v36  ;;  %v1587_v37 = vpop.xlane.xlu1 %1586 }
 0xfeb   :  { %2752 = vpow2.f32 %v1610_v33  ;;  %v1599_v12 = vsub.f32 %v1567_v50, %v1587_v37 }
 0xfec   :  { %v2749_v40 = vpop.eup %2748 }
 0xfed   :  { %v1627_v42 = vsel %vm560_vm5, %v2749_v40, 0.0  ;;  %v1612_v5 = vmul.f32 1.442695, %v1599_v12 }
 0xfee   :  { %1628 = vadd.xlane.f32.xlu0 %v1627_v42  ;;  %v1590_v45 = vpop.xlane.xlu1 %1589 }
 0xfef   :  { %v1600_v46 = vsub.f32 %v1568_v52, %v1590_v45 }
 0xff1   :  { %v1614_v48 = vmul.f32 1.442695, %v1600_v46 }
 0xff2   :  { %v1593_v51 = vpop.xlane.xlu1 %1592 }
 0xff3   :  { %2754 = vpow2.f32 %v1614_v48  ;;  %v1601_v53 = vsub.f32 %v1569_v22, %v1593_v51 }
 0xff4   :  { %v2751_v55 = vpop.eup %2750  ;;  %2756 = vpow2.f32 %v1612_v5 }
 0xff5   :  { %v1616_v56 = vmul.f32 1.442695, %v1601_v53  ;;  %v1621_v9 = vsel %vm560_vm5, %v2751_v55, 0.0 }
 0xff6   :  { %1622 = vadd.xlane.f32.xlu1 %v1621_v9  ;;  %v1668_v59 = vpop.permute.xlu1 %1667 }
 0xff7   :  { %2578 = vmatpush3.bf16.msra.mxu1 %v1668_v59  ;;  %2758 = vpow2.f32 %v1616_v56 }
 0xff8   :  { %v3283_v61 = vpop.eup %2752  ;;  %2589 = vmatprep.subr.bf16.mxu1 %v2791_v15  ;;  %2760 = vpow2.f32 %v1602_v7 }
 0xff9   :  { %v1630_v35 = vsel %vm560_vm5, %v3283_v61, 0.0 }
 0xffa   :  { %1631 = vadd.xlane.f32.xlu1 %v1630_v35 }
0x1000   :  { %v3288_v0 = vpop.eup %2754 }
0x1001   :  { %v1636_v1 = vsel %vm560_vm5, %v3288_v0, 0.0  ;;  %v3292_v58 = vpop.eup %2756 }
0x1002   :  { %1637 = vadd.xlane.f32.xlu1 %v1636_v1  ;;  %v1633_v2 = vsel %vm560_vm5, %v3292_v58, 0.0 }
0x1004   :  { %1715 = vrot.lane.b32.xlu0 %v3222_v28, %s2801_s2  ;;  %v3298_v4 = vpop.eup %2758 }
0x1005   :  { %v1639_v6 = vsel %vm560_vm5, %v3298_v4, 0.0  ;;  %v2761_v8 = vpop.eup %2760 }
0x1006   :  { %1634 = vadd.xlane.f32.xlu1 %v1633_v2  ;;  %v1618_v47 = vsel %vm560_vm5, %v2761_v8, 0.0 }
0x100a   :  { %1640 = vadd.xlane.f32.xlu1 %v1639_v6 }
0x101b   :  { %1954 = vrot.lane.b32.xlu1 %v3222_v28, %s2803_s21 }
0x1023   :  { %1619 = vadd.xlane.f32.xlu0 %v1618_v47 }
0x1039   :  { %1857 = vrot.lane.b32.xlu0 %v3222_v28, %s2802_s20 }
0x1073   :  { %v1626_v13 = vpop.xlane.xlu0 %1625 }
0x1074   :  { %2762 = vrcp.f32 %v1626_v13  ;;  %v2335_v13 = vld [vmem:[%s3422_s7 + $0x1c] sm:$0xf] }
0x1077   :  { %v1629_v14 = vpop.xlane.xlu0 %1628 }
0x1078   :  { %2764 = vrcp.f32 %v1629_v14 }
0x107b   :  { %v1716_v17 = vpop.permute.xlu0 %1715 }
0x107c   :  { %2584 = vmatpush3.bf16.msra.mxu0 %v1716_v17 }
0x107d   :  { %2595 = vmatprep.subr.bf16.mxu0 %v2791_v15 }
0x107f   :  { %v1623_v22 = vpop.xlane.xlu1 %1622 }
0x1080   :  { %2766 = vrcp.f32 %v1623_v22 }
0x1081   :  { %v2763_v60 = vpop.eup %2762 }
0x1082   :  { %v1652_v19 = vmul.f32 %v2763_v60, %v2747_v32  ;;  %v2006_v60 = vsel %vm756_vm6, %v2335_v13, 0 }
0x1083   :  { %v1632_v26 = vpop.xlane.xlu1 %1631 }
0x1085   :  { %v2765_v50 = vpop.eup %2764 }
0x1086   :  { %v1653_v52 = vmul.f32 %v2765_v50, %v2749_v40 }
0x1088   :  { %v1659_v21 = vpack.c.bf16 %v1653_v52, %v1652_v19 }
0x108a   :  { %2586 = vmatmul.mubr.msk.bf16.vlgmr.msra.gmra.mxu0 %vm560_vm5, %v1659_v21 }
0x108b   :  { %2597 = vmatprep.mubr.msk.bf16.mxu0 %vm2792_vm2, %v2791_v15  ;;  %2596 = vmatpush3.bf16.msra.mxu0 %v1814_v24  ;;  %v1638_v49 = vpop.xlane.xlu1 %1637 }
0x108c   :  { %2607 = vmatprep.subr.bf16.mxu0 %v2791_v15 }
0x108d   :  { %v2767_v16 = vpop.eup %2766 }
0x108e   :  { %v1651_v11 = vmul.f32 %v2767_v16, %v2751_v55 }
0x108f   :  { %v1635_v27 = vpop.xlane.xlu1 %1634 }
0x1093   :  { %v1641_v29 = vpop.xlane.xlu1 %1640 }
0x1097   :  { %v1955_v51 = vpop.permute.xlu1 %1954 }
0x10ac   :  { %v1620_v28 = vpop.xlane.xlu0 %1619 }
0x10ad   :  { %2768 = vrcp.f32 %v1620_v28 }
0x10ae   :  { %2770 = vrcp.f32 %v1635_v27 }
0x10af   :  { %2772 = vrcp.f32 %v1632_v26 }
0x10b0   :  { %2774 = vrcp.f32 %v1641_v29  ;;  %v1858_v12 = vpop.permute.xlu0 %1857 }
0x10b1   :  { %2776 = vrcp.f32 %v1638_v49 }
0x10ba   :  { %v2769_v41 = vpop.eup %2768 }
0x10bb   :  { %v1650_v43 = vmul.f32 %v2769_v41, %v2761_v8  ;;  %v2771_v37 = vpop.eup %2770 }
0x10bc   :  { %v2773_v42 = vpop.eup %2772  ;;  %v1655_v45 = vmul.f32 %v2771_v37, %v3292_v58 }
0x10bd   :  { %v1658_v23 = vpack.c.bf16 %v1651_v11, %v1650_v43  ;;  %v1654_v46 = vmul.f32 %v2773_v42, %v3283_v61  ;;  %v2775_v48 = vpop.eup %2774 }
0x10be   :  { %v2777_v53 = vpop.eup %2776  ;;  %v1657_v55 = vmul.f32 %v2775_v48, %v3298_v4 }
0x10bf   :  { %2580 = vmatmul.mubr.msk.bf16.vlgmr.msra.gmra.mxu1 %vm560_vm5, %v1658_v23  ;;  %v1660_v5 = vpack.c.bf16 %v1655_v45, %v1654_v46  ;;  %v1656_v56 = vmul.f32 %v2777_v53, %v3288_v0  ;;  %v2334_v0 = vld [vmem:[%s3422_s7 + $0x18] sm:$0xf] }
0x10c0   :  { %2591 = vmatprep.mubr.msk.bf16.mxu1 %vm2792_vm2, %v2791_v15  ;;  %2590 = vmatpush3.bf16.msra.mxu1 %v1767_v44  ;;  %v1909_v2 = vsel %vm756_vm6, %v2334_v0, 0 }
0x10c1   :  { %2601 = vmatprep.subr.bf16.mxu1 %v2791_v15  ;;  %v1661_v9 = vpack.c.bf16 %v1657_v55, %v1656_v56 }
0x114a   :  { %v1755_v30 = vpop.f32.mrf.mxu0 }
0x114c   :  { %v2587_v32 = vpop.f32.mrf.mxu0 }
0x114e   :  { %v1758_v33 = vpop.f32.mrf.mxu0 }
0x114f   :  { %v1762_v36 = vpack.c.bf16 %v1758_v33, %v1755_v30  ;;  %v2056_v30 = vrot.slane %v3208_v3, %v1046_v57 }
0x1150   :  { %v2588_v40 = vpop.f32.mrf.mxu0 }
0x1151   :  { %2592 = vmatmul.mubr.msk.bf16.vlgmr.msra.gmra.mxu1 %vm351_vm4, %v1762_v36 }
0x1152   :  { %2602 = vmatpush3.bf16.msra.mxu1 %v1858_v12  ;;  %2603 = vmatprep.mubr.msk.bf16.mxu1 %vm2792_vm2, %v2791_v15 }
0x1153   :  { %2613 = vmatprep.subr.bf16.mxu1 %v2791_v15 }
0x1159   :  { %2604 = vmatmul.mubr.msk.bf16.vlgmr.msra.gmra.mxu1 %vm560_vm5, %v1660_v5 }
0x115a   :  { %2614 = vmatpush3.bf16.msra.mxu1 %v1955_v51  ;;  %2615 = vmatprep.mubr.msk.bf16.mxu1 %vm2792_vm2, %v2791_v15 }
0x115b   :  { %2625 = vmatprep.subr.bf16.mxu1 %v2791_v15 }
0x1161   :  { %2616 = vmatmul.mubr.msk.bf16.vlgmr.msra.gmra.mxu1 %vm560_vm5, %v1661_v9 }
0x1162   :  { %2629 = vmatprep.mubr.msk.bf16.mxu1 %vm2792_vm2, %v2791_v15 }
0x117f   :  { %v1707_v59 = vpop.f32.mrf.mxu1 }
0x1181   :  { %v2581_v61 = vpop.f32.mrf.mxu1 }
0x1183   :  { %v1710_v35 = vpop.f32.mrf.mxu1 }
0x1184   :  { %v1714_v1 = vpack.c.bf16 %v1710_v35, %v1707_v59  ;;  %v2684_v35 = vld [vmem:[%s3423_s8 + $0x18] sm:$0xff]  }
0x1185   :  { %v2582_v58 = vpop.f32.mrf.mxu1  ;;  %2626 = vmatpush3.bf16.msra.mxu1 %v2684_v35 }
0x1186   :  { %2598 = vmatmul.mubr.msk.bf16.vlgmr.msra.gmra.mxu0 %vm351_vm4, %v1714_v1  ;;  %v2685_v1 = vld [vmem:[%s3423_s8 + $0x10] sm:$0xff]   ;;  %2627 = vmatprep.subr.bf16.mxu1 %v2791_v15 }
0x1187   :  { %2609 = vmatprep.mubr.msk.bf16.mxu0 %vm2792_vm2, %v2791_v15  ;;  %2608 = vmatpush3.bf16.msra.mxu0 %v1909_v2 }
0x1188   :  { %2619 = vmatprep.subr.bf16.mxu0 %v2791_v15 }
0x1189   :  { %2628 = vmatpush3.bf16.msra.mxu1 %v2685_v1 }
0x1211   :  { %v1803_v4 = vpop.f32.mrf.mxu1 }
0x1213   :  { %v2593_v6 = vpop.f32.mrf.mxu1 }
0x1215   :  { %v1806_v63 = vpop.f32.mrf.mxu1 }
0x1217   :  { %v2594_v7 = vpop.f32.mrf.mxu1 }
0x1219   :  { %v1897_v8 = vpop.f32.mrf.mxu1 }
0x121b   :  { %v2605_v47 = vpop.f32.mrf.mxu1 }
0x121d   :  { %v1900_v14 = vpop.f32.mrf.mxu1 }
0x121e   :  { %v1904_v17 = vpack.c.bf16 %v1900_v14, %v1897_v8  ;;  %v2088_v8 = vrot.slane %v3208_v3, %v1078_v34  ;;  %v2687_v34 = vld [vmem:[%s3424_s9 + $0x30] sm:$0xff]  }
0x121f   :  { %v2606_v50 = vpop.f32.mrf.mxu1 }
0x1220   :  { %2610 = vmatmul.mubr.msk.bf16.vlgmr.msra.gmra.mxu0 %vm351_vm4, %v1904_v17  ;;  %v2094_v17 = vrot.slane %v3208_v3, %v1084_v39  ;;  %v2688_v39 = vld [vmem:[%s3424_s9 + $0x28] sm:$0xff]  }
0x1221   :  { %v1994_v19 = vpop.f32.mrf.mxu1  ;;  %2620 = vmatpush3.bf16.msra.mxu0 %v2006_v60  ;;  %2621 = vmatprep.mubr.msk.bf16.mxu0 %vm2792_vm2, %v2791_v15 }
0x1222   :  { %2633 = vmatprep.subr.bf16.mxu0 %v2791_v15 }
0x1223   :  { %v2617_v52 = vpop.f32.mrf.mxu1 }
0x1225   :  { %v1997_v21 = vpop.f32.mrf.mxu1 }
0x1226   :  { %v2001_v22 = vpack.c.bf16 %v1997_v21, %v1994_v19  ;;  %v2686_v21 = vld [vmem:[%s3424_s9 + $0x38] sm:$0xff]  }
0x1227   :  { %v2618_v28 = vpop.f32.mrf.mxu1 }
0x1228   :  { %2622 = vmatmul.mubr.msk.bf16.vlgmr.msra.gmra.mxu0 %vm351_vm4, %v2001_v22  ;;  %v2689_v22 = vld [vmem:[%s3424_s9 + $0x20] sm:$0xff]   ;;  %v2106_v28 = vrot.slane %v3208_v3, %v1095_v62 }
0x1229   :  { %2641 = vmatprep.mubr.msk.bf16.mxu0 %vm2792_vm2, %v2791_v15  ;;  %2634 = vmatpush3.bf16.msra.mxu0 %v2686_v21 }
0x122a   :  { %2635 = vmatprep.subr.bf16.mxu0 %v2791_v15 }
0x122d   :  { %2636 = vmatpush3.bf16.msra.mxu0 %v2687_v34 }
0x122e   :  { %2637 = vmatprep.subr.bf16.mxu0 %v2791_v15 }
0x1231   :  { %2638 = vmatpush3.bf16.msra.mxu0 %v2688_v39 }
0x1232   :  { %2639 = vmatprep.subr.bf16.mxu0 %v2791_v15 }
0x1235   :  { %2640 = vmatpush3.bf16.msra.mxu0 %v2689_v22 }
0x1246   :  { %v1850_v16 = vpop.f32.mrf.mxu0 }
0x1247   :  { %v1851_v41 = vadd.f32 %v1850_v16, %v1803_v4 }
0x1248   :  { %v2599_v43 = vpop.f32.mrf.mxu0 }
0x124a   :  { %v1853_v11 = vpop.f32.mrf.mxu0 }
0x124b   :  { %v1854_v23 = vadd.f32 %v1853_v11, %v1806_v63 }
0x124c   :  { %v2600_v18 = vpop.f32.mrf.mxu0 }
0x12e0   :  { %v1945_v44 = vpop.f32.mrf.mxu0 }
0x12e1   :  { %v1952_v49 = vadd.f32 %v1945_v44, %v1851_v41 }
0x12e2   :  { %v2611_v54 = vpop.f32.mrf.mxu0 }
0x12e4   :  { %v1948_v24 = vpop.f32.mrf.mxu0 }
0x12e5   :  { %v1953_v33 = vadd.f32 %v1948_v24, %v1854_v23 }
0x12e6   :  { %v2612_v26 = vpop.f32.mrf.mxu0 }
0x12e8   :  { %v2042_v27 = vpop.f32.mrf.mxu0 }
0x12e9   :  { %v2049_v29 = vadd.f32 %v2042_v27, %v1952_v49 }
0x12ea   :  { %v2623_v32 = vpop.f32.mrf.mxu0 }
0x12eb   :  { %v2051_v36 = vadd.f32 %v2049_v29, %v3186_v31 }
0x12ec   :  { %v2045_v37 = vpop.f32.mrf.mxu0 }
0x12ed   :  { %v2050_v40 = vadd.f32 %v2045_v37, %v1953_v33  ;;  %v3363_v12 = vadd.f32 %v2056_v30, %v2051_v36  ;;  %v2192_v37 = vrot.slane %v3208_v3, %v1180_v25 }
0x12ee   :  { %v2624_v42 = vpop.f32.mrf.mxu0 }
0x12ef   :  { %v2052_v45 = vadd.f32 %v2050_v40, %v3191_v38  ;;  %v2059_v46 = vmul.f32 %v2909_v20, %v3363_v12 }
0x12f1   :  { %2061 = vadd.xlane.f32.xlu1 %v2059_v46  ;;  %v3368_v5 = vadd.f32 %v2056_v30, %v2052_v45 }
0x12f3   :  { %v2060_v57 = vmul.f32 %v2909_v20, %v3368_v5 }
0x12f5   :  { %2063 = vadd.xlane.f32.xlu0 %v2060_v57 }
0x137a   :  { %v2062_v48 = vpop.xlane.xlu1 %2061 }
0x137b   :  { %v2065_v51 = vmul.f32 0.03125, %v2062_v48 }
0x137d   :  { %v2067_v31 = vsub.f32 %v2059_v46, %v2065_v51 }
0x137e   :  { %v2064_v53 = vpop.xlane.xlu0 %2063 }
0x137f   :  { %v2066_v55 = vmul.f32 0.03125, %v2064_v53  ;;  %v2069_v56 = vmul.f32 %v2909_v20, %v2067_v31 }
0x1381   :  { %v2068_v9 = vsub.f32 %v2060_v57, %v2066_v55  ;;  %v2071_v59 = vmul.f32 %v2069_v56, %v2069_v56 }
0x1383   :  { %2073 = vadd.xlane.f32.xlu1 %v2071_v59  ;;  %v2070_v38 = vmul.f32 %v2909_v20, %v2068_v9 }
0x1385   :  { %v2072_v61 = vmul.f32 %v2070_v38, %v2070_v38 }
0x1387   :  { %2075 = vadd.xlane.f32.xlu1 %v2072_v61 }
0x140c   :  { %v2074_v58 = vpop.xlane.xlu1 %2073 }
0x140d   :  { %v2077_v0 = vmul.f32 0.03125, %v2074_v58 }
0x140f   :  { %v2079_v2 = vadd.f32 1e-05, %v2077_v0 }
0x1410   :  { %v2076_v4 = vpop.xlane.xlu1 %2075 }
0x1411   :  { %2778 = vrsqrt.f32 %v2079_v2  ;;  %v2078_v20 = vmul.f32 0.03125, %v2076_v4 }
0x1413   :  { %v2080_v6 = vadd.f32 1e-05, %v2078_v20 }
0x1415   :  { %2780 = vrsqrt.f32 %v2080_v6 }
0x141e   :  { %v2779_v63 = vpop.eup %2778 }
0x141f   :  { %v2083_v7 = vmul.f32 %v2779_v63, %v2069_v56 }
0x1421   :  { %v2089_v14 = vmul.f32 %v2088_v8, %v2083_v7 }
0x1422   :  { %v2781_v47 = vpop.eup %2780 }
0x1423   :  { %v2084_v13 = vmul.f32 %v2781_v47, %v2070_v38  ;;  %v2095_v50 = vadd.f32 %v2094_v17, %v2089_v14 }
0x1425   :  { %v2090_v60 = vmul.f32 %v2088_v8, %v2084_v13 }
0x1427   :  { %v2096_v19 = vadd.f32 %v2094_v17, %v2090_v60 }
0x1429   :  { %v2097_v52 = vpack.c.bf16 %v2096_v19, %v2095_v50 }
0x142b   :  { %2630 = vmatmul.mubr.msk.bf16.vlgmr.msra.gmra.mxu1 %vm302_vm3, %v2097_v52 }
0x14eb   :  { %v2156_v16 = vpop.f32.mrf.mxu1 }
0x14ec   :  { %v2157_v41 = vadd.f32 %v2156_v16, %v2106_v28 }
0x14ed   :  { %v2631_v43 = vpop.f32.mrf.mxu1 }
0x14ee   :  { %v2351_v11 = vmul.f32 -1.702, %v2157_v41 }
0x14ef   :  { %v2159_v23 = vpop.f32.mrf.mxu1 }
0x14f0   :  { %v2167_v18 = vmul.f32 1.442695, %v2351_v11  ;;  %v2160_v44 = vadd.f32 %v2159_v23, %v2106_v28 }
0x14f1   :  { %v2632_v54 = vpop.f32.mrf.mxu1 }
0x14f2   :  { %2782 = vpow2.f32 %v2167_v18  ;;  %v2352_v24 = vmul.f32 -1.702, %v2160_v44 }
0x14f4   :  { %v2169_v15 = vmul.f32 1.442695, %v2352_v24 }
0x14f6   :  { %2784 = vpow2.f32 %v2169_v15 }
0x14ff   :  { %v2783_v26 = vpop.eup %2782 }
0x1500   :  { %v2171_v49 = vadd.f32 1.0, %v2783_v26 }
0x1502   :  { %2786 = vrcp.f32 %v2171_v49 }
0x1503   :  { %v2785_v27 = vpop.eup %2784 }
0x1504   :  { %v2172_v29 = vadd.f32 1.0, %v2785_v27 }
0x1506   :  { %2788 = vrcp.f32 %v2172_v29 }
0x150f   :  { %v2787_v30 = vpop.eup %2786 }
0x1510   :  { %v2177_v32 = vmul.f32 %v2787_v30, %v2157_v41 }
0x1513   :  { %v2789_v62 = vpop.eup %2788 }
0x1514   :  { %v2178_v33 = vmul.f32 %v2789_v62, %v2160_v44 }
0x1516   :  { %v2179_v36 = vpack.c.bf16 %v2178_v33, %v2177_v32 }
0x1518   :  { %2642 = vmatmul.mubr.msk.bf16.vlgmr.msra.gmra.mxu0 %vm157_vm0, %v2179_v36 }
0x15d8   :  { %v2254_v40 = vpop.f32.mrf.mxu0 }
0x15d9   :  { %v2255_v45 = vadd.f32 %v2254_v40, %v2192_v37 }
0x15da   :  { %v2643_v42 = vpop.f32.mrf.mxu0 }
0x15db   :  { %v2261_v51 = vadd.f32 %v2255_v45, %v3363_v12 }
0x15dc   :  { %v2257_v46 = vpop.f32.mrf.mxu0 }
0x15dd   :  { %v2258_v57 = vadd.f32 %v2257_v46, %v2192_v37 }
0x15de   :  { %v2644_v48 = vpop.f32.mrf.mxu0 }
0x15df   :  { %v2262_v31 = vadd.f32 %v2258_v57, %v3368_v5 }
0x15e1   :  { %v2373_v53 = vpack.c.bf16 %v2262_v31, %v2261_v51 }
0x15e3   :  { %2374 = vst [vmem:[%s3425_s10] sm:$0xff] %v2373_v53  }

</bundles_post_ra>
